<compile_context>
chip_gen: v6e
topology: v6e:2x2x1
jax: 0.10.0
libtpu: 0.0.40
codegen_flags: <defaults>
</compile_context>

<pallas_src>
import functools
import math

import jax
import jax.numpy as jnp
from jax.experimental import pallas as pl
from jax.experimental.pallas import tpu as pltpu


# ------------------------- fused encoder-layer kernel -----------------------

def _encoder_layer_kernel(*refs, num_heads, input_ln, with_pooler, eps=1e-12):
    """One full BERT encoder layer for one batch element (grid is over batch).

    Ref order (inputs): x, mask, [ln0_g, ln0_b], wqkv, bqkv, wo, bo,
                        ln1_g, ln1_b, wi, bi, wo2, bo2, ln2_g, ln2_b,
                        [pooler_w, pooler_b]
    Ref order (outputs): y, [pooled]
    """
    it = iter(refs)
    x_ref = next(it)
    mask_ref = next(it)
    if input_ln:
        g0_ref, b0_ref = next(it), next(it)
    wqkv_ref, bqkv_ref = next(it), next(it)
    wo_ref, bo_ref = next(it), next(it)
    g1_ref, b1_ref = next(it), next(it)
    wi_ref, bi_ref = next(it), next(it)
    wo2_ref, bo2_ref = next(it), next(it)
    g2_ref, b2_ref = next(it), next(it)
    if with_pooler:
        wp_ref, bp_ref = next(it), next(it)
    y_ref = next(it)
    if with_pooler:
        pooled_ref = next(it)

    def layer_norm(v, g, b):
        mean = jnp.mean(v, axis=-1, keepdims=True)
        var = jnp.mean(jnp.square(v - mean), axis=-1, keepdims=True)
        return (v - mean) * jax.lax.rsqrt(var + eps) * g + b

    x = x_ref[...]                                   # (S, H)
    H = x.shape[-1]
    d = H // num_heads
    scale = 1.0 / math.sqrt(d)

    if input_ln:                                     # embedding LayerNorm (layer 0 only)
        x = layer_norm(x, g0_ref[...], b0_ref[...])

    # ---- self-attention: fused QKV matmul, all heads in one kernel ----
    qkv = jnp.dot(x, wqkv_ref[...], preferred_element_type=jnp.float32) + bqkv_ref[...]
    mask = mask_ref[0]                               # (1, S) additive bias (0 / -10000)
    wo = wo_ref[...]                                 # (H, H)

    # concat_h(ctx_h) @ wo  ==  sum_h ctx_h @ wo[h*d:(h+1)*d, :]  (exact identity)
    acc = None
    for h in range(num_heads):
        q = qkv[:, h * d:(h + 1) * d]                # (S, d)
        k = qkv[:, H + h * d:H + (h + 1) * d]
        v = qkv[:, 2 * H + h * d:2 * H + (h + 1) * d]
        s = jnp.dot(q, k.T, preferred_element_type=jnp.float32) * scale + mask
        s = s - jnp.max(s, axis=-1, keepdims=True)
        p = jnp.exp(s)
        p = p * pl.reciprocal(jnp.sum(p, axis=-1, keepdims=True), approx=True)
        ctx_h = jnp.dot(p, v, preferred_element_type=jnp.float32)           # (S, d)
        contrib = jnp.dot(ctx_h, wo[h * d:(h + 1) * d, :],
                          preferred_element_type=jnp.float32)               # (S, H)
        acc = contrib if acc is None else acc + contrib
    attn_out = acc + bo_ref[...]

    # residual + LayerNorm folded into the same kernel
    x1 = layer_norm(attn_out + x, g1_ref[...], b1_ref[...])

    # ---- feed-forward (exact erf GELU, matching HF "gelu") ----
    hmid = jnp.dot(x1, wi_ref[...], preferred_element_type=jnp.float32) + bi_ref[...]
    hmid = 0.5 * hmid * (1.0 + jax.lax.erf(hmid * (1.0 / math.sqrt(2.0))))
    ffn_out = jnp.dot(hmid, wo2_ref[...], preferred_element_type=jnp.float32) + bo2_ref[...]
    x2 = layer_norm(ffn_out + x1, g2_ref[...], b2_ref[...])

    y_ref[...] = x2.astype(y_ref.dtype)

    if with_pooler:                                  # pooler epilogue (last layer only)
        cls = x2[0:1, :]                             # [CLS] token of this batch element
        pooled = jnp.tanh(
            jnp.dot(cls, wp_ref[...], preferred_element_type=jnp.float32) + bp_ref[...])
        pooled_ref[0] = pooled.astype(pooled_ref.dtype)


def encoder_layer(x, mask_bias, layer, *, emb_ln, pooler, num_heads, B, S):
    """Runs one fused encoder layer. Grid over batch ('parallel' for multi-TC)."""
    H = x.shape[1]
    input_ln = emb_ln is not None
    with_pooler = pooler is not None

    # Fuse Q/K/V projections into one (H, 3H) matmul.
    wqkv = jnp.concatenate([layer["wq"], layer["wk"], layer["wv"]], axis=1)
    bqkv = jnp.concatenate([layer["bq"], layer["bk"], layer["bv"]])

    inputs = [x, mask_bias]
    in_specs = [
        pl.BlockSpec((S, H), lambda b: (b, 0)),          # per-batch token block
        pl.BlockSpec((1, 1, S), lambda b: (b, 0, 0)),    # per-batch mask bias
    ]

    def add_const(arr):
        arr = jnp.asarray(arr, jnp.float32)
        if arr.ndim == 1:
            arr = arr.reshape(1, -1)
        inputs.append(arr)
        nd = arr.ndim
        in_specs.append(pl.BlockSpec(arr.shape, lambda b, _nd=nd: (0,) * _nd))

    if input_ln:
        add_const(emb_ln[0]); add_const(emb_ln[1])
    add_const(wqkv); add_const(bqkv)
    add_const(layer["wo"]); add_const(layer["bo"])
    add_const(layer["ln1_g"]); add_const(layer["ln1_b"])
    add_const(layer["wi"]); add_const(layer["bi"])
    add_const(layer["wo2"]); add_const(layer["bo2"])
    add_const(layer["ln2_g"]); add_const(layer["ln2_b"])
    if with_pooler:
        add_const(pooler[0]); add_const(pooler[1])

    if with_pooler:
        out_shape = (jax.ShapeDtypeStruct((B * S, H), jnp.float32),
                     jax.ShapeDtypeStruct((B, 1, H), jnp.float32))
        out_specs = (pl.BlockSpec((S, H), lambda b: (b, 0)),
                     pl.BlockSpec((1, 1, H), lambda b: (b, 0, 0)))
    else:
        out_shape = jax.ShapeDtypeStruct((B * S, H), jnp.float32)
        out_specs = pl.BlockSpec((S, H), lambda b: (b, 0))

    kernel = functools.partial(
        _encoder_layer_kernel, num_heads=num_heads,
        input_ln=input_ln, with_pooler=with_pooler)

    result = pl.pallas_call(
        kernel,
        out_shape=out_shape,
        grid=(B,),
        in_specs=in_specs,
        out_specs=out_specs,
        compiler_params=pltpu.CompilerParams(dimension_semantics=("parallel",)),
    )(*inputs)

    if with_pooler:
        x_out, pooled = result
        return x_out, pooled.reshape(B, H)
    return result, None


# ----------------------- parameter init (deterministic) --------------------

def init_params(key, *, vocab=100, max_pos=16, type_vocab=2, H=32, I=64, L=2):
    keys = iter(jax.random.split(key, 8 + 8 * L))

    def w(shape):
        return (0.02 * jax.random.normal(next(keys), shape)).astype(jnp.float32)

    params = {
        "word_emb": w((vocab, H)),
        "pos_emb": w((max_pos, H)),
        "type_emb": w((type_vocab, H)),
        "emb_ln_g": jnp.ones((H,), jnp.float32),
        "emb_ln_b": jnp.zeros((H,), jnp.float32),
        "pooler_w": w((H, H)),
        "pooler_b": jnp.zeros((H,), jnp.float32),
        "layers": [],
    }
    for _ in range(L):
        params["layers"].append({
            "wq": w((H, H)), "bq": jnp.zeros((H,), jnp.float32),
            "wk": w((H, H)), "bk": jnp.zeros((H,), jnp.float32),
            "wv": w((H, H)), "bv": jnp.zeros((H,), jnp.float32),
            "wo": w((H, H)), "bo": jnp.zeros((H,), jnp.float32),
            "ln1_g": jnp.ones((H,), jnp.float32), "ln1_b": jnp.zeros((H,), jnp.float32),
            "wi": w((H, I)), "bi": jnp.zeros((I,), jnp.float32),
            "wo2": w((I, H)), "bo2": jnp.zeros((H,), jnp.float32),
            "ln2_g": jnp.ones((H,), jnp.float32), "ln2_b": jnp.zeros((H,), jnp.float32),
        })
    return params


# ------------------------------ forward pass -------------------------------

def triplet_network_forward(params, input_ids, attention_mask, *, num_heads=4):
    """Equivalent of TripletNetwork.forward: returns the BERT pooler output."""
    B, S = input_ids.shape
    H = params["word_emb"].shape[1]

    # Embedding lookups are gathers -> plain-JAX glue; everything else in-kernel.
    x = (params["word_emb"][input_ids]
         + params["pos_emb"][jnp.arange(S)][None, :, :]
         + params["type_emb"][jnp.zeros((B, S), jnp.int32)])
    x = x.reshape(B * S, H).astype(jnp.float32)

    # HF-style extended attention mask: 0 for keep, -10000 for masked.
    mask_bias = ((1.0 - attention_mask.astype(jnp.float32)) * -10000.0).reshape(B, 1, S)

    n_layers = len(params["layers"])
    pooled = None
    for li, layer in enumerate(params["layers"]):
        emb_ln = (params["emb_ln_g"], params["emb_ln_b"]) if li == 0 else None
        pooler = (params["pooler_w"], params["pooler_b"]) if li == n_layers - 1 else None
        x, pooled = encoder_layer(
            x, mask_bias, layer, emb_ln=emb_ln, pooler=pooler,
            num_heads=num_heads, B=B, S=S)
    return pooled


# ---------------------------------- main -----------------------------------

if __name__ == "__main__":
    # TODO(synk): original module loads pretrained `bert-base-uncased` weights;
    # here weights are deterministic random at a scaled-down config.
    B, S, H = 2, 8, 32
    key = jax.random.PRNGKey(0)
    pkey, ikey = jax.random.split(key)

    params = init_params(pkey, H=H, I=2 * H, L=2, max_pos=16, vocab=100)

    input_ids = jax.random.randint(ikey, (B, S), 0, 100, dtype=jnp.int32)
    attention_mask = jnp.array(
        [[1, 1, 1, 1, 1, 1, 1, 1],
         [1, 1, 1, 1, 1, 0, 0, 0]], dtype=jnp.int32)

    forward = jax.jit(functools.partial(triplet_network_forward, num_heads=4))
    pooled = forward(params, input_ids, attention_mask)
    pooled = jax.block_until_ready(pooled)
    assert pooled.shape == (B, H) and pooled.dtype == jnp.float32
    print("KERNEL_OK")
</pallas_src>

<mosaic_0001>
module attributes {stable_mosaic.version = 11 : i64} {
  func.func @_encoder_layer_kernel(%arg0: i32, %arg1: memref<8x32xf32, #tpu.memory_space<vmem>>, %arg2: memref<1x1x8xf32, #tpu.memory_space<vmem>>, %arg3: memref<1x32xf32, #tpu.memory_space<vmem>>, %arg4: memref<1x32xf32, #tpu.memory_space<vmem>>, %arg5: memref<32x96xf32, #tpu.memory_space<vmem>>, %arg6: memref<1x96xf32, #tpu.memory_space<vmem>>, %arg7: memref<32x32xf32, #tpu.memory_space<vmem>>, %arg8: memref<1x32xf32, #tpu.memory_space<vmem>>, %arg9: memref<1x32xf32, #tpu.memory_space<vmem>>, %arg10: memref<1x32xf32, #tpu.memory_space<vmem>>, %arg11: memref<32x64xf32, #tpu.memory_space<vmem>>, %arg12: memref<1x64xf32, #tpu.memory_space<vmem>>, %arg13: memref<64x32xf32, #tpu.memory_space<vmem>>, %arg14: memref<1x32xf32, #tpu.memory_space<vmem>>, %arg15: memref<1x32xf32, #tpu.memory_space<vmem>>, %arg16: memref<1x32xf32, #tpu.memory_space<vmem>>, %arg17: memref<8x32xf32, #tpu.memory_space<vmem>>) attributes {dimension_semantics = [#tpu.dimension_semantics<parallel>], iteration_bounds = array<i64: 2>, scalar_prefetch = 0 : i64, scratch_operands = 0 : i64, tpu.core_type = #tpu.core_type<tc>, window_params = [{transform_indices = @transform_0, window_bounds = array<i64: 8, 32>}, {transform_indices = @transform_1, window_bounds = array<i64: 1, 1, 8>}, {pipeline_mode = #tpu.pipeline_mode<synchronous>, transform_indices = @transform_2, window_bounds = array<i64: 1, 32>}, {pipeline_mode = #tpu.pipeline_mode<synchronous>, transform_indices = @transform_3, window_bounds = array<i64: 1, 32>}, {pipeline_mode = #tpu.pipeline_mode<synchronous>, transform_indices = @transform_4, window_bounds = array<i64: 32, 96>}, {pipeline_mode = #tpu.pipeline_mode<synchronous>, transform_indices = @transform_5, window_bounds = array<i64: 1, 96>}, {pipeline_mode = #tpu.pipeline_mode<synchronous>, transform_indices = @transform_6, window_bounds = array<i64: 32, 32>}, {pipeline_mode = #tpu.pipeline_mode<synchronous>, transform_indices = @transform_7, window_bounds = array<i64: 1, 32>}, {pipeline_mode = #tpu.pipeline_mode<synchronous>, transform_indices = @transform_8, window_bounds = array<i64: 1, 32>}, {pipeline_mode = #tpu.pipeline_mode<synchronous>, transform_indices = @transform_9, window_bounds = array<i64: 1, 32>}, {pipeline_mode = #tpu.pipeline_mode<synchronous>, transform_indices = @transform_10, window_bounds = array<i64: 32, 64>}, {pipeline_mode = #tpu.pipeline_mode<synchronous>, transform_indices = @transform_11, window_bounds = array<i64: 1, 64>}, {pipeline_mode = #tpu.pipeline_mode<synchronous>, transform_indices = @transform_12, window_bounds = array<i64: 64, 32>}, {pipeline_mode = #tpu.pipeline_mode<synchronous>, transform_indices = @transform_13, window_bounds = array<i64: 1, 32>}, {pipeline_mode = #tpu.pipeline_mode<synchronous>, transform_indices = @transform_14, window_bounds = array<i64: 1, 32>}, {pipeline_mode = #tpu.pipeline_mode<synchronous>, transform_indices = @transform_15, window_bounds = array<i64: 1, 32>}, {transform_indices = @transform_16, window_bounds = array<i64: 8, 32>}]} {
    %c0 = arith.constant 0 : index
    %c0_0 = arith.constant 0 : index
    %0 = vector.load %arg1[%c0, %c0_0] : memref<8x32xf32, #tpu.memory_space<vmem>>, vector<8x32xf32>
    %c0_1 = arith.constant 0 : index
    %c0_2 = arith.constant 0 : index
    %1 = vector.load %arg3[%c0_1, %c0_2] : memref<1x32xf32, #tpu.memory_space<vmem>>, vector<1x32xf32>
    %c0_3 = arith.constant 0 : index
    %c0_4 = arith.constant 0 : index
    %2 = vector.load %arg4[%c0_3, %c0_4] : memref<1x32xf32, #tpu.memory_space<vmem>>, vector<1x32xf32>
    %cst = arith.constant dense<0.000000e+00> : vector<8xf32>
    %3 = vector.multi_reduction <add>, %0, %cst [1] : vector<8x32xf32> to vector<8xf32>
    %4 = vector.shape_cast %3 : vector<8xf32> to vector<8x1xf32>
    %cst_5 = arith.constant 3.200000e+01 : f32
    %5 = vector.broadcast %cst_5 : f32 to vector<8x1xf32>
    %6 = arith.divf %4, %5 : vector<8x1xf32>
    %7 = vector.broadcast %6 : vector<8x1xf32> to vector<8x32xf32>
    %8 = arith.subf %0, %7 : vector<8x32xf32>
    %9 = arith.mulf %8, %8 : vector<8x32xf32>
    %cst_6 = arith.constant dense<0.000000e+00> : vector<8xf32>
    %10 = vector.multi_reduction <add>, %9, %cst_6 [1] : vector<8x32xf32> to vector<8xf32>
    %11 = vector.shape_cast %10 : vector<8xf32> to vector<8x1xf32>
    %cst_7 = arith.constant 3.200000e+01 : f32
    %12 = vector.broadcast %cst_7 : f32 to vector<8x1xf32>
    %13 = arith.divf %11, %12 : vector<8x1xf32>
    %14 = vector.broadcast %6 : vector<8x1xf32> to vector<8x32xf32>
    %15 = arith.subf %0, %14 : vector<8x32xf32>
    %cst_8 = arith.constant 9.99999996E-13 : f32
    %16 = vector.broadcast %cst_8 : f32 to vector<8x1xf32>
    %17 = arith.addf %13, %16 : vector<8x1xf32>
    %18 = math.rsqrt %17 : vector<8x1xf32>
    %19 = vector.broadcast %18 : vector<8x1xf32> to vector<8x32xf32>
    %20 = arith.mulf %15, %19 : vector<8x32xf32>
    %21 = vector.broadcast %1 : vector<1x32xf32> to vector<8x32xf32>
    %22 = arith.mulf %20, %21 : vector<8x32xf32>
    %23 = vector.broadcast %2 : vector<1x32xf32> to vector<8x32xf32>
    %24 = arith.addf %22, %23 : vector<8x32xf32>
    %c0_9 = arith.constant 0 : index
    %c0_10 = arith.constant 0 : index
    %25 = vector.load %arg5[%c0_9, %c0_10] : memref<32x96xf32, #tpu.memory_space<vmem>>, vector<32x96xf32>
    %cst_11 = arith.constant dense<0.000000e+00> : vector<8x96xf32>
    %26 = tpu.matmul %24, %25, %cst_11 {dimension_numbers = #tpu.dot_dimension_numbers<[1], [0], [0], [1], [0, 0, 1, 1], [], []>} : vector<8x32xf32>, vector<32x96xf32>, vector<8x96xf32> -> vector<8x96xf32>
    %c0_12 = arith.constant 0 : index
    %c0_13 = arith.constant 0 : index
    %27 = vector.load %arg6[%c0_12, %c0_13] : memref<1x96xf32, #tpu.memory_space<vmem>>, vector<1x96xf32>
    %28 = vector.broadcast %27 : vector<1x96xf32> to vector<8x96xf32>
    %29 = arith.addf %26, %28 : vector<8x96xf32>
    %c0_14 = arith.constant 0 : index
    %c0_15 = arith.constant 0 : index
    %c0_16 = arith.constant 0 : index
    %30 = vector.load %arg2[%c0_14, %c0_15, %c0_16] : memref<1x1x8xf32, #tpu.memory_space<vmem>>, vector<1x1x8xf32>
    %31 = vector.shape_cast %30 : vector<1x1x8xf32> to vector<1x8xf32>
    %c0_17 = arith.constant 0 : index
    %c0_18 = arith.constant 0 : index
    %32 = vector.load %arg7[%c0_17, %c0_18] : memref<32x32xf32, #tpu.memory_space<vmem>>, vector<32x32xf32>
    %33 = vector.extract_strided_slice %29 {offsets = [0, 0], sizes = [8, 8], strides = [1, 1]} : vector<8x96xf32> to vector<8x8xf32>
    %34 = vector.extract_strided_slice %29 {offsets = [0, 32], sizes = [8, 8], strides = [1, 1]} : vector<8x96xf32> to vector<8x8xf32>
    %35 = vector.extract_strided_slice %29 {offsets = [0, 64], sizes = [8, 8], strides = [1, 1]} : vector<8x96xf32> to vector<8x8xf32>
    %36 = tpu.transpose %34, [1, 0] : vector<8x8xf32> -> vector<8x8xf32>
    %cst_19 = arith.constant dense<0.000000e+00> : vector<8x8xf32>
    %37 = tpu.matmul %33, %36, %cst_19 {dimension_numbers = #tpu.dot_dimension_numbers<[1], [0], [0], [1], [0, 0, 1, 1], [], []>} : vector<8x8xf32>, vector<8x8xf32>, vector<8x8xf32> -> vector<8x8xf32>
    %cst_20 = arith.constant 0.353553385 : f32
    %38 = vector.broadcast %cst_20 : f32 to vector<8x8xf32>
    %39 = arith.mulf %37, %38 : vector<8x8xf32>
    %40 = vector.broadcast %31 : vector<1x8xf32> to vector<8x8xf32>
    %41 = arith.addf %39, %40 : vector<8x8xf32>
    %cst_21 = arith.constant dense<0xFF800000> : vector<8xf32>
    %42 = vector.multi_reduction <maximumf>, %41, %cst_21 [1] : vector<8x8xf32> to vector<8xf32>
    %43 = vector.shape_cast %42 : vector<8xf32> to vector<8x1xf32>
    %44 = vector.broadcast %43 : vector<8x1xf32> to vector<8x8xf32>
    %45 = arith.subf %41, %44 : vector<8x8xf32>
    %46 = math.exp %45 : vector<8x8xf32>
    %cst_22 = arith.constant dense<0.000000e+00> : vector<8xf32>
    %47 = vector.multi_reduction <add>, %46, %cst_22 [1] : vector<8x8xf32> to vector<8xf32>
    %48 = vector.shape_cast %47 : vector<8xf32> to vector<8x1xf32>
    %49 = tpu.reciprocal %48 {approx = true} : vector<8x1xf32> -> vector<8x1xf32>
    %50 = vector.broadcast %49 : vector<8x1xf32> to vector<8x8xf32>
    %51 = arith.mulf %46, %50 : vector<8x8xf32>
    %cst_23 = arith.constant dense<0.000000e+00> : vector<8x8xf32>
    %52 = tpu.matmul %51, %35, %cst_23 {dimension_numbers = #tpu.dot_dimension_numbers<[1], [0], [0], [1], [0, 0, 1, 1], [], []>} : vector<8x8xf32>, vector<8x8xf32>, vector<8x8xf32> -> vector<8x8xf32>
    %53 = vector.extract_strided_slice %32 {offsets = [0, 0], sizes = [8, 32], strides = [1, 1]} : vector<32x32xf32> to vector<8x32xf32>
    %cst_24 = arith.constant dense<0.000000e+00> : vector<8x32xf32>
    %54 = tpu.matmul %52, %53, %cst_24 {dimension_numbers = #tpu.dot_dimension_numbers<[1], [0], [0], [1], [0, 0, 1, 1], [], []>} : vector<8x8xf32>, vector<8x32xf32>, vector<8x32xf32> -> vector<8x32xf32>
    %55 = vector.extract_strided_slice %29 {offsets = [0, 8], sizes = [8, 8], strides = [1, 1]} : vector<8x96xf32> to vector<8x8xf32>
    %56 = vector.extract_strided_slice %29 {offsets = [0, 40], sizes = [8, 8], strides = [1, 1]} : vector<8x96xf32> to vector<8x8xf32>
    %57 = vector.extract_strided_slice %29 {offsets = [0, 72], sizes = [8, 8], strides = [1, 1]} : vector<8x96xf32> to vector<8x8xf32>
    %58 = tpu.transpose %56, [1, 0] : vector<8x8xf32> -> vector<8x8xf32>
    %cst_25 = arith.constant dense<0.000000e+00> : vector<8x8xf32>
    %59 = tpu.matmul %55, %58, %cst_25 {dimension_numbers = #tpu.dot_dimension_numbers<[1], [0], [0], [1], [0, 0, 1, 1], [], []>} : vector<8x8xf32>, vector<8x8xf32>, vector<8x8xf32> -> vector<8x8xf32>
    %cst_26 = arith.constant 0.353553385 : f32
    %60 = vector.broadcast %cst_26 : f32 to vector<8x8xf32>
    %61 = arith.mulf %59, %60 : vector<8x8xf32>
    %62 = vector.broadcast %31 : vector<1x8xf32> to vector<8x8xf32>
    %63 = arith.addf %61, %62 : vector<8x8xf32>
    %cst_27 = arith.constant dense<0xFF800000> : vector<8xf32>
    %64 = vector.multi_reduction <maximumf>, %63, %cst_27 [1] : vector<8x8xf32> to vector<8xf32>
    %65 = vector.shape_cast %64 : vector<8xf32> to vector<8x1xf32>
    %66 = vector.broadcast %65 : vector<8x1xf32> to vector<8x8xf32>
    %67 = arith.subf %63, %66 : vector<8x8xf32>
    %68 = math.exp %67 : vector<8x8xf32>
    %cst_28 = arith.constant dense<0.000000e+00> : vector<8xf32>
    %69 = vector.multi_reduction <add>, %68, %cst_28 [1] : vector<8x8xf32> to vector<8xf32>
    %70 = vector.shape_cast %69 : vector<8xf32> to vector<8x1xf32>
    %71 = tpu.reciprocal %70 {approx = true} : vector<8x1xf32> -> vector<8x1xf32>
    %72 = vector.broadcast %71 : vector<8x1xf32> to vector<8x8xf32>
    %73 = arith.mulf %68, %72 : vector<8x8xf32>
    %cst_29 = arith.constant dense<0.000000e+00> : vector<8x8xf32>
    %74 = tpu.matmul %73, %57, %cst_29 {dimension_numbers = #tpu.dot_dimension_numbers<[1], [0], [0], [1], [0, 0, 1, 1], [], []>} : vector<8x8xf32>, vector<8x8xf32>, vector<8x8xf32> -> vector<8x8xf32>
    %75 = vector.extract_strided_slice %32 {offsets = [8, 0], sizes = [8, 32], strides = [1, 1]} : vector<32x32xf32> to vector<8x32xf32>
    %cst_30 = arith.constant dense<0.000000e+00> : vector<8x32xf32>
    %76 = tpu.matmul %74, %75, %cst_30 {dimension_numbers = #tpu.dot_dimension_numbers<[1], [0], [0], [1], [0, 0, 1, 1], [], []>} : vector<8x8xf32>, vector<8x32xf32>, vector<8x32xf32> -> vector<8x32xf32>
    %77 = arith.addf %54, %76 : vector<8x32xf32>
    %78 = vector.extract_strided_slice %29 {offsets = [0, 16], sizes = [8, 8], strides = [1, 1]} : vector<8x96xf32> to vector<8x8xf32>
    %79 = vector.extract_strided_slice %29 {offsets = [0, 48], sizes = [8, 8], strides = [1, 1]} : vector<8x96xf32> to vector<8x8xf32>
    %80 = vector.extract_strided_slice %29 {offsets = [0, 80], sizes = [8, 8], strides = [1, 1]} : vector<8x96xf32> to vector<8x8xf32>
    %81 = tpu.transpose %79, [1, 0] : vector<8x8xf32> -> vector<8x8xf32>
    %cst_31 = arith.constant dense<0.000000e+00> : vector<8x8xf32>
    %82 = tpu.matmul %78, %81, %cst_31 {dimension_numbers = #tpu.dot_dimension_numbers<[1], [0], [0], [1], [0, 0, 1, 1], [], []>} : vector<8x8xf32>, vector<8x8xf32>, vector<8x8xf32> -> vector<8x8xf32>
    %cst_32 = arith.constant 0.353553385 : f32
    %83 = vector.broadcast %cst_32 : f32 to vector<8x8xf32>
    %84 = arith.mulf %82, %83 : vector<8x8xf32>
    %85 = vector.broadcast %31 : vector<1x8xf32> to vector<8x8xf32>
    %86 = arith.addf %84, %85 : vector<8x8xf32>
    %cst_33 = arith.constant dense<0xFF800000> : vector<8xf32>
    %87 = vector.multi_reduction <maximumf>, %86, %cst_33 [1] : vector<8x8xf32> to vector<8xf32>
    %88 = vector.shape_cast %87 : vector<8xf32> to vector<8x1xf32>
    %89 = vector.broadcast %88 : vector<8x1xf32> to vector<8x8xf32>
    %90 = arith.subf %86, %89 : vector<8x8xf32>
    %91 = math.exp %90 : vector<8x8xf32>
    %cst_34 = arith.constant dense<0.000000e+00> : vector<8xf32>
    %92 = vector.multi_reduction <add>, %91, %cst_34 [1] : vector<8x8xf32> to vector<8xf32>
    %93 = vector.shape_cast %92 : vector<8xf32> to vector<8x1xf32>
    %94 = tpu.reciprocal %93 {approx = true} : vector<8x1xf32> -> vector<8x1xf32>
    %95 = vector.broadcast %94 : vector<8x1xf32> to vector<8x8xf32>
    %96 = arith.mulf %91, %95 : vector<8x8xf32>
    %cst_35 = arith.constant dense<0.000000e+00> : vector<8x8xf32>
    %97 = tpu.matmul %96, %80, %cst_35 {dimension_numbers = #tpu.dot_dimension_numbers<[1], [0], [0], [1], [0, 0, 1, 1], [], []>} : vector<8x8xf32>, vector<8x8xf32>, vector<8x8xf32> -> vector<8x8xf32>
    %98 = vector.extract_strided_slice %32 {offsets = [16, 0], sizes = [8, 32], strides = [1, 1]} : vector<32x32xf32> to vector<8x32xf32>
    %cst_36 = arith.constant dense<0.000000e+00> : vector<8x32xf32>
    %99 = tpu.matmul %97, %98, %cst_36 {dimension_numbers = #tpu.dot_dimension_numbers<[1], [0], [0], [1], [0, 0, 1, 1], [], []>} : vector<8x8xf32>, vector<8x32xf32>, vector<8x32xf32> -> vector<8x32xf32>
    %100 = arith.addf %77, %99 : vector<8x32xf32>
    %101 = vector.extract_strided_slice %29 {offsets = [0, 24], sizes = [8, 8], strides = [1, 1]} : vector<8x96xf32> to vector<8x8xf32>
    %102 = vector.extract_strided_slice %29 {offsets = [0, 56], sizes = [8, 8], strides = [1, 1]} : vector<8x96xf32> to vector<8x8xf32>
    %103 = vector.extract_strided_slice %29 {offsets = [0, 88], sizes = [8, 8], strides = [1, 1]} : vector<8x96xf32> to vector<8x8xf32>
    %104 = tpu.transpose %102, [1, 0] : vector<8x8xf32> -> vector<8x8xf32>
    %cst_37 = arith.constant dense<0.000000e+00> : vector<8x8xf32>
    %105 = tpu.matmul %101, %104, %cst_37 {dimension_numbers = #tpu.dot_dimension_numbers<[1], [0], [0], [1], [0, 0, 1, 1], [], []>} : vector<8x8xf32>, vector<8x8xf32>, vector<8x8xf32> -> vector<8x8xf32>
    %cst_38 = arith.constant 0.353553385 : f32
    %106 = vector.broadcast %cst_38 : f32 to vector<8x8xf32>
    %107 = arith.mulf %105, %106 : vector<8x8xf32>
    %108 = vector.broadcast %31 : vector<1x8xf32> to vector<8x8xf32>
    %109 = arith.addf %107, %108 : vector<8x8xf32>
    %cst_39 = arith.constant dense<0xFF800000> : vector<8xf32>
    %110 = vector.multi_reduction <maximumf>, %109, %cst_39 [1] : vector<8x8xf32> to vector<8xf32>
    %111 = vector.shape_cast %110 : vector<8xf32> to vector<8x1xf32>
    %112 = vector.broadcast %111 : vector<8x1xf32> to vector<8x8xf32>
    %113 = arith.subf %109, %112 : vector<8x8xf32>
    %114 = math.exp %113 : vector<8x8xf32>
    %cst_40 = arith.constant dense<0.000000e+00> : vector<8xf32>
    %115 = vector.multi_reduction <add>, %114, %cst_40 [1] : vector<8x8xf32> to vector<8xf32>
    %116 = vector.shape_cast %115 : vector<8xf32> to vector<8x1xf32>
    %117 = tpu.reciprocal %116 {approx = true} : vector<8x1xf32> -> vector<8x1xf32>
    %118 = vector.broadcast %117 : vector<8x1xf32> to vector<8x8xf32>
    %119 = arith.mulf %114, %118 : vector<8x8xf32>
    %cst_41 = arith.constant dense<0.000000e+00> : vector<8x8xf32>
    %120 = tpu.matmul %119, %103, %cst_41 {dimension_numbers = #tpu.dot_dimension_numbers<[1], [0], [0], [1], [0, 0, 1, 1], [], []>} : vector<8x8xf32>, vector<8x8xf32>, vector<8x8xf32> -> vector<8x8xf32>
    %121 = vector.extract_strided_slice %32 {offsets = [24, 0], sizes = [8, 32], strides = [1, 1]} : vector<32x32xf32> to vector<8x32xf32>
    %cst_42 = arith.constant dense<0.000000e+00> : vector<8x32xf32>
    %122 = tpu.matmul %120, %121, %cst_42 {dimension_numbers = #tpu.dot_dimension_numbers<[1], [0], [0], [1], [0, 0, 1, 1], [], []>} : vector<8x8xf32>, vector<8x32xf32>, vector<8x32xf32> -> vector<8x32xf32>
    %123 = arith.addf %100, %122 : vector<8x32xf32>
    %c0_43 = arith.constant 0 : index
    %c0_44 = arith.constant 0 : index
    %124 = vector.load %arg8[%c0_43, %c0_44] : memref<1x32xf32, #tpu.memory_space<vmem>>, vector<1x32xf32>
    %125 = vector.broadcast %124 : vector<1x32xf32> to vector<8x32xf32>
    %126 = arith.addf %123, %125 : vector<8x32xf32>
    %127 = arith.addf %126, %24 : vector<8x32xf32>
    %c0_45 = arith.constant 0 : index
    %c0_46 = arith.constant 0 : index
    %128 = vector.load %arg9[%c0_45, %c0_46] : memref<1x32xf32, #tpu.memory_space<vmem>>, vector<1x32xf32>
    %c0_47 = arith.constant 0 : index
    %c0_48 = arith.constant 0 : index
    %129 = vector.load %arg10[%c0_47, %c0_48] : memref<1x32xf32, #tpu.memory_space<vmem>>, vector<1x32xf32>
    %cst_49 = arith.constant dense<0.000000e+00> : vector<8xf32>
    %130 = vector.multi_reduction <add>, %127, %cst_49 [1] : vector<8x32xf32> to vector<8xf32>
    %131 = vector.shape_cast %130 : vector<8xf32> to vector<8x1xf32>
    %cst_50 = arith.constant 3.200000e+01 : f32
    %132 = vector.broadcast %cst_50 : f32 to vector<8x1xf32>
    %133 = arith.divf %131, %132 : vector<8x1xf32>
    %134 = vector.broadcast %133 : vector<8x1xf32> to vector<8x32xf32>
    %135 = arith.subf %127, %134 : vector<8x32xf32>
    %136 = arith.mulf %135, %135 : vector<8x32xf32>
    %cst_51 = arith.constant dense<0.000000e+00> : vector<8xf32>
    %137 = vector.multi_reduction <add>, %136, %cst_51 [1] : vector<8x32xf32> to vector<8xf32>
    %138 = vector.shape_cast %137 : vector<8xf32> to vector<8x1xf32>
    %cst_52 = arith.constant 3.200000e+01 : f32
    %139 = vector.broadcast %cst_52 : f32 to vector<8x1xf32>
    %140 = arith.divf %138, %139 : vector<8x1xf32>
    %141 = vector.broadcast %133 : vector<8x1xf32> to vector<8x32xf32>
    %142 = arith.subf %127, %141 : vector<8x32xf32>
    %cst_53 = arith.constant 9.99999996E-13 : f32
    %143 = vector.broadcast %cst_53 : f32 to vector<8x1xf32>
    %144 = arith.addf %140, %143 : vector<8x1xf32>
    %145 = math.rsqrt %144 : vector<8x1xf32>
    %146 = vector.broadcast %145 : vector<8x1xf32> to vector<8x32xf32>
    %147 = arith.mulf %142, %146 : vector<8x32xf32>
    %148 = vector.broadcast %128 : vector<1x32xf32> to vector<8x32xf32>
    %149 = arith.mulf %147, %148 : vector<8x32xf32>
    %150 = vector.broadcast %129 : vector<1x32xf32> to vector<8x32xf32>
    %151 = arith.addf %149, %150 : vector<8x32xf32>
    %c0_54 = arith.constant 0 : index
    %c0_55 = arith.constant 0 : index
    %152 = vector.load %arg11[%c0_54, %c0_55] : memref<32x64xf32, #tpu.memory_space<vmem>>, vector<32x64xf32>
    %cst_56 = arith.constant dense<0.000000e+00> : vector<8x64xf32>
    %153 = tpu.matmul %151, %152, %cst_56 {dimension_numbers = #tpu.dot_dimension_numbers<[1], [0], [0], [1], [0, 0, 1, 1], [], []>} : vector<8x32xf32>, vector<32x64xf32>, vector<8x64xf32> -> vector<8x64xf32>
    %c0_57 = arith.constant 0 : index
    %c0_58 = arith.constant 0 : index
    %154 = vector.load %arg12[%c0_57, %c0_58] : memref<1x64xf32, #tpu.memory_space<vmem>>, vector<1x64xf32>
    %155 = vector.broadcast %154 : vector<1x64xf32> to vector<8x64xf32>
    %156 = arith.addf %153, %155 : vector<8x64xf32>
    %cst_59 = arith.constant 5.000000e-01 : f32
    %157 = vector.broadcast %cst_59 : f32 to vector<8x64xf32>
    %158 = arith.mulf %157, %156 : vector<8x64xf32>
    %cst_60 = arith.constant 0.707106769 : f32
    %159 = vector.broadcast %cst_60 : f32 to vector<8x64xf32>
    %160 = arith.mulf %156, %159 : vector<8x64xf32>
    %161 = math.erf %160 : vector<8x64xf32>
    %cst_61 = arith.constant 1.000000e+00 : f32
    %162 = vector.broadcast %cst_61 : f32 to vector<8x64xf32>
    %163 = arith.addf %162, %161 : vector<8x64xf32>
    %164 = arith.mulf %158, %163 : vector<8x64xf32>
    %c0_62 = arith.constant 0 : index
    %c0_63 = arith.constant 0 : index
    %165 = vector.load %arg13[%c0_62, %c0_63] : memref<64x32xf32, #tpu.memory_space<vmem>>, vector<64x32xf32>
    %cst_64 = arith.constant dense<0.000000e+00> : vector<8x32xf32>
    %166 = tpu.matmul %164, %165, %cst_64 {dimension_numbers = #tpu.dot_dimension_numbers<[1], [0], [0], [1], [0, 0, 1, 1], [], []>} : vector<8x64xf32>, vector<64x32xf32>, vector<8x32xf32> -> vector<8x32xf32>
    %c0_65 = arith.constant 0 : index
    %c0_66 = arith.constant 0 : index
    %167 = vector.load %arg14[%c0_65, %c0_66] : memref<1x32xf32, #tpu.memory_space<vmem>>, vector<1x32xf32>
    %168 = vector.broadcast %167 : vector<1x32xf32> to vector<8x32xf32>
    %169 = arith.addf %166, %168 : vector<8x32xf32>
    %170 = arith.addf %169, %151 : vector<8x32xf32>
    %c0_67 = arith.constant 0 : index
    %c0_68 = arith.constant 0 : index
    %171 = vector.load %arg15[%c0_67, %c0_68] : memref<1x32xf32, #tpu.memory_space<vmem>>, vector<1x32xf32>
    %c0_69 = arith.constant 0 : index
    %c0_70 = arith.constant 0 : index
    %172 = vector.load %arg16[%c0_69, %c0_70] : memref<1x32xf32, #tpu.memory_space<vmem>>, vector<1x32xf32>
    %cst_71 = arith.constant dense<0.000000e+00> : vector<8xf32>
    %173 = vector.multi_reduction <add>, %170, %cst_71 [1] : vector<8x32xf32> to vector<8xf32>
    %174 = vector.shape_cast %173 : vector<8xf32> to vector<8x1xf32>
    %cst_72 = arith.constant 3.200000e+01 : f32
    %175 = vector.broadcast %cst_72 : f32 to vector<8x1xf32>
    %176 = arith.divf %174, %175 : vector<8x1xf32>
    %177 = vector.broadcast %176 : vector<8x1xf32> to vector<8x32xf32>
    %178 = arith.subf %170, %177 : vector<8x32xf32>
    %179 = arith.mulf %178, %178 : vector<8x32xf32>
    %cst_73 = arith.constant dense<0.000000e+00> : vector<8xf32>
    %180 = vector.multi_reduction <add>, %179, %cst_73 [1] : vector<8x32xf32> to vector<8xf32>
    %181 = vector.shape_cast %180 : vector<8xf32> to vector<8x1xf32>
    %cst_74 = arith.constant 3.200000e+01 : f32
    %182 = vector.broadcast %cst_74 : f32 to vector<8x1xf32>
    %183 = arith.divf %181, %182 : vector<8x1xf32>
    %184 = vector.broadcast %176 : vector<8x1xf32> to vector<8x32xf32>
    %185 = arith.subf %170, %184 : vector<8x32xf32>
    %cst_75 = arith.constant 9.99999996E-13 : f32
    %186 = vector.broadcast %cst_75 : f32 to vector<8x1xf32>
    %187 = arith.addf %183, %186 : vector<8x1xf32>
    %188 = math.rsqrt %187 : vector<8x1xf32>
    %189 = vector.broadcast %188 : vector<8x1xf32> to vector<8x32xf32>
    %190 = arith.mulf %185, %189 : vector<8x32xf32>
    %191 = vector.broadcast %171 : vector<1x32xf32> to vector<8x32xf32>
    %192 = arith.mulf %190, %191 : vector<8x32xf32>
    %193 = vector.broadcast %172 : vector<1x32xf32> to vector<8x32xf32>
    %194 = arith.addf %192, %193 : vector<8x32xf32>
    %c0_76 = arith.constant 0 : index
    %c0_77 = arith.constant 0 : index
    %195 = vector.load %arg17[%c0_76, %c0_77] : memref<8x32xf32, #tpu.memory_space<vmem>>, vector<8x32xf32>
    tpu.vector_store %arg17[%c0_76, %c0_77], %194 {strides = array<i32>} : memref<8x32xf32, #tpu.memory_space<vmem>>, vector<8x32xf32>,
    return
  }
  func.func @transform_0(%arg0: i32) -> (i32, i32) {
    %c0_i32 = arith.constant 0 : i32
    %c0_i32_0 = arith.constant 0 : i32
    return %arg0, %c0_i32 : i32, i32
  }
  func.func @transform_1(%arg0: i32) -> (i32, i32, i32) {
    %c0_i32 = arith.constant 0 : i32
    %c0_i32_0 = arith.constant 0 : i32
    %c0_i32_1 = arith.constant 0 : i32
    return %arg0, %c0_i32, %c0_i32_0 : i32, i32, i32
  }
  func.func @transform_2(%arg0: i32) -> (i32, i32) {
    %c0_i32 = arith.constant 0 : i32
    %c0_i32_0 = arith.constant 0 : i32
    %c0_i32_1 = arith.constant 0 : i32
    return %c0_i32, %c0_i32_0 : i32, i32
  }
  func.func @transform_3(%arg0: i32) -> (i32, i32) {
    %c0_i32 = arith.constant 0 : i32
    %c0_i32_0 = arith.constant 0 : i32
    %c0_i32_1 = arith.constant 0 : i32
    return %c0_i32, %c0_i32_0 : i32, i32
  }
  func.func @transform_4(%arg0: i32) -> (i32, i32) {
    %c0_i32 = arith.constant 0 : i32
    %c0_i32_0 = arith.constant 0 : i32
    %c0_i32_1 = arith.constant 0 : i32
    return %c0_i32, %c0_i32_0 : i32, i32
  }
  func.func @transform_5(%arg0: i32) -> (i32, i32) {
    %c0_i32 = arith.constant 0 : i32
    %c0_i32_0 = arith.constant 0 : i32
    %c0_i32_1 = arith.constant 0 : i32
    return %c0_i32, %c0_i32_0 : i32, i32
  }
  func.func @transform_6(%arg0: i32) -> (i32, i32) {
    %c0_i32 = arith.constant 0 : i32
    %c0_i32_0 = arith.constant 0 : i32
    %c0_i32_1 = arith.constant 0 : i32
    return %c0_i32, %c0_i32_0 : i32, i32
  }
  func.func @transform_7(%arg0: i32) -> (i32, i32) {
    %c0_i32 = arith.constant 0 : i32
    %c0_i32_0 = arith.constant 0 : i32
    %c0_i32_1 = arith.constant 0 : i32
    return %c0_i32, %c0_i32_0 : i32, i32
  }
  func.func @transform_8(%arg0: i32) -> (i32, i32) {
    %c0_i32 = arith.constant 0 : i32
    %c0_i32_0 = arith.constant 0 : i32
    %c0_i32_1 = arith.constant 0 : i32
    return %c0_i32, %c0_i32_0 : i32, i32
  }
  func.func @transform_9(%arg0: i32) -> (i32, i32) {
    %c0_i32 = arith.constant 0 : i32
    %c0_i32_0 = arith.constant 0 : i32
    %c0_i32_1 = arith.constant 0 : i32
    return %c0_i32, %c0_i32_0 : i32, i32
  }
  func.func @transform_10(%arg0: i32) -> (i32, i32) {
    %c0_i32 = arith.constant 0 : i32
    %c0_i32_0 = arith.constant 0 : i32
    %c0_i32_1 = arith.constant 0 : i32
    return %c0_i32, %c0_i32_0 : i32, i32
  }
  func.func @transform_11(%arg0: i32) -> (i32, i32) {
    %c0_i32 = arith.constant 0 : i32
    %c0_i32_0 = arith.constant 0 : i32
    %c0_i32_1 = arith.constant 0 : i32
    return %c0_i32, %c0_i32_0 : i32, i32
  }
  func.func @transform_12(%arg0: i32) -> (i32, i32) {
    %c0_i32 = arith.constant 0 : i32
    %c0_i32_0 = arith.constant 0 : i32
    %c0_i32_1 = arith.constant 0 : i32
    return %c0_i32, %c0_i32_0 : i32, i32
  }
  func.func @transform_13(%arg0: i32) -> (i32, i32) {
    %c0_i32 = arith.constant 0 : i32
    %c0_i32_0 = arith.constant 0 : i32
    %c0_i32_1 = arith.constant 0 : i32
    return %c0_i32, %c0_i32_0 : i32, i32
  }
  func.func @transform_14(%arg0: i32) -> (i32, i32) {
    %c0_i32 = arith.constant 0 : i32
    %c0_i32_0 = arith.constant 0 : i32
    %c0_i32_1 = arith.constant 0 : i32
    return %c0_i32, %c0_i32_0 : i32, i32
  }
  func.func @transform_15(%arg0: i32) -> (i32, i32) {
    %c0_i32 = arith.constant 0 : i32
    %c0_i32_0 = arith.constant 0 : i32
    %c0_i32_1 = arith.constant 0 : i32
    return %c0_i32, %c0_i32_0 : i32, i32
  }
  func.func @transform_16(%arg0: i32) -> (i32, i32) {
    %c0_i32 = arith.constant 0 : i32
    %c0_i32_0 = arith.constant 0 : i32
    return %arg0, %c0_i32 : i32, i32
  }
}

module attributes {stable_mosaic.version = 11 : i64} {
  func.func @_encoder_layer_kernel(%arg0: i32, %arg1: memref<8x32xf32, #tpu.memory_space<vmem>>, %arg2: memref<1x1x8xf32, #tpu.memory_space<vmem>>, %arg3: memref<32x96xf32, #tpu.memory_space<vmem>>, %arg4: memref<1x96xf32, #tpu.memory_space<vmem>>, %arg5: memref<32x32xf32, #tpu.memory_space<vmem>>, %arg6: memref<1x32xf32, #tpu.memory_space<vmem>>, %arg7: memref<1x32xf32, #tpu.memory_space<vmem>>, %arg8: memref<1x32xf32, #tpu.memory_space<vmem>>, %arg9: memref<32x64xf32, #tpu.memory_space<vmem>>, %arg10: memref<1x64xf32, #tpu.memory_space<vmem>>, %arg11: memref<64x32xf32, #tpu.memory_space<vmem>>, %arg12: memref<1x32xf32, #tpu.memory_space<vmem>>, %arg13: memref<1x32xf32, #tpu.memory_space<vmem>>, %arg14: memref<1x32xf32, #tpu.memory_space<vmem>>, %arg15: memref<32x32xf32, #tpu.memory_space<vmem>>, %arg16: memref<1x32xf32, #tpu.memory_space<vmem>>, %arg17: memref<8x32xf32, #tpu.memory_space<vmem>>, %arg18: memref<1x1x32xf32, #tpu.memory_space<vmem>>) attributes {dimension_semantics = [#tpu.dimension_semantics<parallel>], iteration_bounds = array<i64: 2>, scalar_prefetch = 0 : i64, scratch_operands = 0 : i64, tpu.core_type = #tpu.core_type<tc>, window_params = [{transform_indices = @transform_0, window_bounds = array<i64: 8, 32>}, {transform_indices = @transform_1, window_bounds = array<i64: 1, 1, 8>}, {pipeline_mode = #tpu.pipeline_mode<synchronous>, transform_indices = @transform_2, window_bounds = array<i64: 32, 96>}, {pipeline_mode = #tpu.pipeline_mode<synchronous>, transform_indices = @transform_3, window_bounds = array<i64: 1, 96>}, {pipeline_mode = #tpu.pipeline_mode<synchronous>, transform_indices = @transform_4, window_bounds = array<i64: 32, 32>}, {pipeline_mode = #tpu.pipeline_mode<synchronous>, transform_indices = @transform_5, window_bounds = array<i64: 1, 32>}, {pipeline_mode = #tpu.pipeline_mode<synchronous>, transform_indices = @transform_6, window_bounds = array<i64: 1, 32>}, {pipeline_mode = #tpu.pipeline_mode<synchronous>, transform_indices = @transform_7, window_bounds = array<i64: 1, 32>}, {pipeline_mode = #tpu.pipeline_mode<synchronous>, transform_indices = @transform_8, window_bounds = array<i64: 32, 64>}, {pipeline_mode = #tpu.pipeline_mode<synchronous>, transform_indices = @transform_9, window_bounds = array<i64: 1, 64>}, {pipeline_mode = #tpu.pipeline_mode<synchronous>, transform_indices = @transform_10, window_bounds = array<i64: 64, 32>}, {pipeline_mode = #tpu.pipeline_mode<synchronous>, transform_indices = @transform_11, window_bounds = array<i64: 1, 32>}, {pipeline_mode = #tpu.pipeline_mode<synchronous>, transform_indices = @transform_12, window_bounds = array<i64: 1, 32>}, {pipeline_mode = #tpu.pipeline_mode<synchronous>, transform_indices = @transform_13, window_bounds = array<i64: 1, 32>}, {pipeline_mode = #tpu.pipeline_mode<synchronous>, transform_indices = @transform_14, window_bounds = array<i64: 32, 32>}, {pipeline_mode = #tpu.pipeline_mode<synchronous>, transform_indices = @transform_15, window_bounds = array<i64: 1, 32>}, {transform_indices = @transform_16, window_bounds = array<i64: 8, 32>}, {transform_indices = @transform_17, window_bounds = array<i64: 1, 1, 32>}]} {
    %c0 = arith.constant 0 : index
    %c0_0 = arith.constant 0 : index
    %0 = vector.load %arg1[%c0, %c0_0] : memref<8x32xf32, #tpu.memory_space<vmem>>, vector<8x32xf32>
    %c0_1 = arith.constant 0 : index
    %c0_2 = arith.constant 0 : index
    %1 = vector.load %arg3[%c0_1, %c0_2] : memref<32x96xf32, #tpu.memory_space<vmem>>, vector<32x96xf32>
    %cst = arith.constant dense<0.000000e+00> : vector<8x96xf32>
    %2 = tpu.matmul %0, %1, %cst {dimension_numbers = #tpu.dot_dimension_numbers<[1], [0], [0], [1], [0, 0, 1, 1], [], []>} : vector<8x32xf32>, vector<32x96xf32>, vector<8x96xf32> -> vector<8x96xf32>
    %c0_3 = arith.constant 0 : index
    %c0_4 = arith.constant 0 : index
    %3 = vector.load %arg4[%c0_3, %c0_4] : memref<1x96xf32, #tpu.memory_space<vmem>>, vector<1x96xf32>
    %4 = vector.broadcast %3 : vector<1x96xf32> to vector<8x96xf32>
    %5 = arith.addf %2, %4 : vector<8x96xf32>
    %c0_5 = arith.constant 0 : index
    %c0_6 = arith.constant 0 : index
    %c0_7 = arith.constant 0 : index
    %6 = vector.load %arg2[%c0_5, %c0_6, %c0_7] : memref<1x1x8xf32, #tpu.memory_space<vmem>>, vector<1x1x8xf32>
    %7 = vector.shape_cast %6 : vector<1x1x8xf32> to vector<1x8xf32>
    %c0_8 = arith.constant 0 : index
    %c0_9 = arith.constant 0 : index
    %8 = vector.load %arg5[%c0_8, %c0_9] : memref<32x32xf32, #tpu.memory_space<vmem>>, vector<32x32xf32>
    %9 = vector.extract_strided_slice %5 {offsets = [0, 0], sizes = [8, 8], strides = [1, 1]} : vector<8x96xf32> to vector<8x8xf32>
    %10 = vector.extract_strided_slice %5 {offsets = [0, 32], sizes = [8, 8], strides = [1, 1]} : vector<8x96xf32> to vector<8x8xf32>
    %11 = vector.extract_strided_slice %5 {offsets = [0, 64], sizes = [8, 8], strides = [1, 1]} : vector<8x96xf32> to vector<8x8xf32>
    %12 = tpu.transpose %10, [1, 0] : vector<8x8xf32> -> vector<8x8xf32>
    %cst_10 = arith.constant dense<0.000000e+00> : vector<8x8xf32>
    %13 = tpu.matmul %9, %12, %cst_10 {dimension_numbers = #tpu.dot_dimension_numbers<[1], [0], [0], [1], [0, 0, 1, 1], [], []>} : vector<8x8xf32>, vector<8x8xf32>, vector<8x8xf32> -> vector<8x8xf32>
    %cst_11 = arith.constant 0.353553385 : f32
    %14 = vector.broadcast %cst_11 : f32 to vector<8x8xf32>
    %15 = arith.mulf %13, %14 : vector<8x8xf32>
    %16 = vector.broadcast %7 : vector<1x8xf32> to vector<8x8xf32>
    %17 = arith.addf %15, %16 : vector<8x8xf32>
    %cst_12 = arith.constant dense<0xFF800000> : vector<8xf32>
    %18 = vector.multi_reduction <maximumf>, %17, %cst_12 [1] : vector<8x8xf32> to vector<8xf32>
    %19 = vector.shape_cast %18 : vector<8xf32> to vector<8x1xf32>
    %20 = vector.broadcast %19 : vector<8x1xf32> to vector<8x8xf32>
    %21 = arith.subf %17, %20 : vector<8x8xf32>
    %22 = math.exp %21 : vector<8x8xf32>
    %cst_13 = arith.constant dense<0.000000e+00> : vector<8xf32>
    %23 = vector.multi_reduction <add>, %22, %cst_13 [1] : vector<8x8xf32> to vector<8xf32>
    %24 = vector.shape_cast %23 : vector<8xf32> to vector<8x1xf32>
    %25 = tpu.reciprocal %24 {approx = true} : vector<8x1xf32> -> vector<8x1xf32>
    %26 = vector.broadcast %25 : vector<8x1xf32> to vector<8x8xf32>
    %27 = arith.mulf %22, %26 : vector<8x8xf32>
    %cst_14 = arith.constant dense<0.000000e+00> : vector<8x8xf32>
    %28 = tpu.matmul %27, %11, %cst_14 {dimension_numbers = #tpu.dot_dimension_numbers<[1], [0], [0], [1], [0, 0, 1, 1], [], []>} : vector<8x8xf32>, vector<8x8xf32>, vector<8x8xf32> -> vector<8x8xf32>
    %29 = vector.extract_strided_slice %8 {offsets = [0, 0], sizes = [8, 32], strides = [1, 1]} : vector<32x32xf32> to vector<8x32xf32>
    %cst_15 = arith.constant dense<0.000000e+00> : vector<8x32xf32>
    %30 = tpu.matmul %28, %29, %cst_15 {dimension_numbers = #tpu.dot_dimension_numbers<[1], [0], [0], [1], [0, 0, 1, 1], [], []>} : vector<8x8xf32>, vector<8x32xf32>, vector<8x32xf32> -> vector<8x32xf32>
    %31 = vector.extract_strided_slice %5 {offsets = [0, 8], sizes = [8, 8], strides = [1, 1]} : vector<8x96xf32> to vector<8x8xf32>
    %32 = vector.extract_strided_slice %5 {offsets = [0, 40], sizes = [8, 8], strides = [1, 1]} : vector<8x96xf32> to vector<8x8xf32>
    %33 = vector.extract_strided_slice %5 {offsets = [0, 72], sizes = [8, 8], strides = [1, 1]} : vector<8x96xf32> to vector<8x8xf32>
    %34 = tpu.transpose %32, [1, 0] : vector<8x8xf32> -> vector<8x8xf32>
    %cst_16 = arith.constant dense<0.000000e+00> : vector<8x8xf32>
    %35 = tpu.matmul %31, %34, %cst_16 {dimension_numbers = #tpu.dot_dimension_numbers<[1], [0], [0], [1], [0, 0, 1, 1], [], []>} : vector<8x8xf32>, vector<8x8xf32>, vector<8x8xf32> -> vector<8x8xf32>
    %cst_17 = arith.constant 0.353553385 : f32
    %36 = vector.broadcast %cst_17 : f32 to vector<8x8xf32>
    %37 = arith.mulf %35, %36 : vector<8x8xf32>
    %38 = vector.broadcast %7 : vector<1x8xf32> to vector<8x8xf32>
    %39 = arith.addf %37, %38 : vector<8x8xf32>
    %cst_18 = arith.constant dense<0xFF800000> : vector<8xf32>
    %40 = vector.multi_reduction <maximumf>, %39, %cst_18 [1] : vector<8x8xf32> to vector<8xf32>
    %41 = vector.shape_cast %40 : vector<8xf32> to vector<8x1xf32>
    %42 = vector.broadcast %41 : vector<8x1xf32> to vector<8x8xf32>
    %43 = arith.subf %39, %42 : vector<8x8xf32>
    %44 = math.exp %43 : vector<8x8xf32>
    %cst_19 = arith.constant dense<0.000000e+00> : vector<8xf32>
    %45 = vector.multi_reduction <add>, %44, %cst_19 [1] : vector<8x8xf32> to vector<8xf32>
    %46 = vector.shape_cast %45 : vector<8xf32> to vector<8x1xf32>
    %47 = tpu.reciprocal %46 {approx = true} : vector<8x1xf32> -> vector<8x1xf32>
    %48 = vector.broadcast %47 : vector<8x1xf32> to vector<8x8xf32>
    %49 = arith.mulf %44, %48 : vector<8x8xf32>
    %cst_20 = arith.constant dense<0.000000e+00> : vector<8x8xf32>
    %50 = tpu.matmul %49, %33, %cst_20 {dimension_numbers = #tpu.dot_dimension_numbers<[1], [0], [0], [1], [0, 0, 1, 1], [], []>} : vector<8x8xf32>, vector<8x8xf32>, vector<8x8xf32> -> vector<8x8xf32>
    %51 = vector.extract_strided_slice %8 {offsets = [8, 0], sizes = [8, 32], strides = [1, 1]} : vector<32x32xf32> to vector<8x32xf32>
    %cst_21 = arith.constant dense<0.000000e+00> : vector<8x32xf32>
    %52 = tpu.matmul %50, %51, %cst_21 {dimension_numbers = #tpu.dot_dimension_numbers<[1], [0], [0], [1], [0, 0, 1, 1], [], []>} : vector<8x8xf32>, vector<8x32xf32>, vector<8x32xf32> -> vector<8x32xf32>
    %53 = arith.addf %30, %52 : vector<8x32xf32>
    %54 = vector.extract_strided_slice %5 {offsets = [0, 16], sizes = [8, 8], strides = [1, 1]} : vector<8x96xf32> to vector<8x8xf32>
    %55 = vector.extract_strided_slice %5 {offsets = [0, 48], sizes = [8, 8], strides = [1, 1]} : vector<8x96xf32> to vector<8x8xf32>
    %56 = vector.extract_strided_slice %5 {offsets = [0, 80], sizes = [8, 8], strides = [1, 1]} : vector<8x96xf32> to vector<8x8xf32>
    %57 = tpu.transpose %55, [1, 0] : vector<8x8xf32> -> vector<8x8xf32>
    %cst_22 = arith.constant dense<0.000000e+00> : vector<8x8xf32>
    %58 = tpu.matmul %54, %57, %cst_22 {dimension_numbers = #tpu.dot_dimension_numbers<[1], [0], [0], [1], [0, 0, 1, 1], [], []>} : vector<8x8xf32>, vector<8x8xf32>, vector<8x8xf32> -> vector<8x8xf32>
    %cst_23 = arith.constant 0.353553385 : f32
    %59 = vector.broadcast %cst_23 : f32 to vector<8x8xf32>
    %60 = arith.mulf %58, %59 : vector<8x8xf32>
    %61 = vector.broadcast %7 : vector<1x8xf32> to vector<8x8xf32>
    %62 = arith.addf %60, %61 : vector<8x8xf32>
    %cst_24 = arith.constant dense<0xFF800000> : vector<8xf32>
    %63 = vector.multi_reduction <maximumf>, %62, %cst_24 [1] : vector<8x8xf32> to vector<8xf32>
    %64 = vector.shape_cast %63 : vector<8xf32> to vector<8x1xf32>
    %65 = vector.broadcast %64 : vector<8x1xf32> to vector<8x8xf32>
    %66 = arith.subf %62, %65 : vector<8x8xf32>
    %67 = math.exp %66 : vector<8x8xf32>
    %cst_25 = arith.constant dense<0.000000e+00> : vector<8xf32>
    %68 = vector.multi_reduction <add>, %67, %cst_25 [1] : vector<8x8xf32> to vector<8xf32>
    %69 = vector.shape_cast %68 : vector<8xf32> to vector<8x1xf32>
    %70 = tpu.reciprocal %69 {approx = true} : vector<8x1xf32> -> vector<8x1xf32>
    %71 = vector.broadcast %70 : vector<8x1xf32> to vector<8x8xf32>
    %72 = arith.mulf %67, %71 : vector<8x8xf32>
    %cst_26 = arith.constant dense<0.000000e+00> : vector<8x8xf32>
    %73 = tpu.matmul %72, %56, %cst_26 {dimension_numbers = #tpu.dot_dimension_numbers<[1], [0], [0], [1], [0, 0, 1, 1], [], []>} : vector<8x8xf32>, vector<8x8xf32>, vector<8x8xf32> -> vector<8x8xf32>
    %74 = vector.extract_strided_slice %8 {offsets = [16, 0], sizes = [8, 32], strides = [1, 1]} : vector<32x32xf32> to vector<8x32xf32>
    %cst_27 = arith.constant dense<0.000000e+00> : vector<8x32xf32>
    %75 = tpu.matmul %73, %74, %cst_27 {dimension_numbers = #tpu.dot_dimension_numbers<[1], [0], [0], [1], [0, 0, 1, 1], [], []>} : vector<8x8xf32>, vector<8x32xf32>, vector<8x32xf32> -> vector<8x32xf32>
    %76 = arith.addf %53, %75 : vector<8x32xf32>
    %77 = vector.extract_strided_slice %5 {offsets = [0, 24], sizes = [8, 8], strides = [1, 1]} : vector<8x96xf32> to vector<8x8xf32>
    %78 = vector.extract_strided_slice %5 {offsets = [0, 56], sizes = [8, 8], strides = [1, 1]} : vector<8x96xf32> to vector<8x8xf32>
    %79 = vector.extract_strided_slice %5 {offsets = [0, 88], sizes = [8, 8], strides = [1, 1]} : vector<8x96xf32> to vector<8x8xf32>
    %80 = tpu.transpose %78, [1, 0] : vector<8x8xf32> -> vector<8x8xf32>
    %cst_28 = arith.constant dense<0.000000e+00> : vector<8x8xf32>
    %81 = tpu.matmul %77, %80, %cst_28 {dimension_numbers = #tpu.dot_dimension_numbers<[1], [0], [0], [1], [0, 0, 1, 1], [], []>} : vector<8x8xf32>, vector<8x8xf32>, vector<8x8xf32> -> vector<8x8xf32>
    %cst_29 = arith.constant 0.353553385 : f32
    %82 = vector.broadcast %cst_29 : f32 to vector<8x8xf32>
    %83 = arith.mulf %81, %82 : vector<8x8xf32>
    %84 = vector.broadcast %7 : vector<1x8xf32> to vector<8x8xf32>
    %85 = arith.addf %83, %84 : vector<8x8xf32>
    %cst_30 = arith.constant dense<0xFF800000> : vector<8xf32>
    %86 = vector.multi_reduction <maximumf>, %85, %cst_30 [1] : vector<8x8xf32> to vector<8xf32>
    %87 = vector.shape_cast %86 : vector<8xf32> to vector<8x1xf32>
    %88 = vector.broadcast %87 : vector<8x1xf32> to vector<8x8xf32>
    %89 = arith.subf %85, %88 : vector<8x8xf32>
    %90 = math.exp %89 : vector<8x8xf32>
    %cst_31 = arith.constant dense<0.000000e+00> : vector<8xf32>
    %91 = vector.multi_reduction <add>, %90, %cst_31 [1] : vector<8x8xf32> to vector<8xf32>
    %92 = vector.shape_cast %91 : vector<8xf32> to vector<8x1xf32>
    %93 = tpu.reciprocal %92 {approx = true} : vector<8x1xf32> -> vector<8x1xf32>
    %94 = vector.broadcast %93 : vector<8x1xf32> to vector<8x8xf32>
    %95 = arith.mulf %90, %94 : vector<8x8xf32>
    %cst_32 = arith.constant dense<0.000000e+00> : vector<8x8xf32>
    %96 = tpu.matmul %95, %79, %cst_32 {dimension_numbers = #tpu.dot_dimension_numbers<[1], [0], [0], [1], [0, 0, 1, 1], [], []>} : vector<8x8xf32>, vector<8x8xf32>, vector<8x8xf32> -> vector<8x8xf32>
    %97 = vector.extract_strided_slice %8 {offsets = [24, 0], sizes = [8, 32], strides = [1, 1]} : vector<32x32xf32> to vector<8x32xf32>
    %cst_33 = arith.constant dense<0.000000e+00> : vector<8x32xf32>
    %98 = tpu.matmul %96, %97, %cst_33 {dimension_numbers = #tpu.dot_dimension_numbers<[1], [0], [0], [1], [0, 0, 1, 1], [], []>} : vector<8x8xf32>, vector<8x32xf32>, vector<8x32xf32> -> vector<8x32xf32>
    %99 = arith.addf %76, %98 : vector<8x32xf32>
    %c0_34 = arith.constant 0 : index
    %c0_35 = arith.constant 0 : index
    %100 = vector.load %arg6[%c0_34, %c0_35] : memref<1x32xf32, #tpu.memory_space<vmem>>, vector<1x32xf32>
    %101 = vector.broadcast %100 : vector<1x32xf32> to vector<8x32xf32>
    %102 = arith.addf %99, %101 : vector<8x32xf32>
    %103 = arith.addf %102, %0 : vector<8x32xf32>
    %c0_36 = arith.constant 0 : index
    %c0_37 = arith.constant 0 : index
    %104 = vector.load %arg7[%c0_36, %c0_37] : memref<1x32xf32, #tpu.memory_space<vmem>>, vector<1x32xf32>
    %c0_38 = arith.constant 0 : index
    %c0_39 = arith.constant 0 : index
    %105 = vector.load %arg8[%c0_38, %c0_39] : memref<1x32xf32, #tpu.memory_space<vmem>>, vector<1x32xf32>
    %cst_40 = arith.constant dense<0.000000e+00> : vector<8xf32>
    %106 = vector.multi_reduction <add>, %103, %cst_40 [1] : vector<8x32xf32> to vector<8xf32>
    %107 = vector.shape_cast %106 : vector<8xf32> to vector<8x1xf32>
    %cst_41 = arith.constant 3.200000e+01 : f32
    %108 = vector.broadcast %cst_41 : f32 to vector<8x1xf32>
    %109 = arith.divf %107, %108 : vector<8x1xf32>
    %110 = vector.broadcast %109 : vector<8x1xf32> to vector<8x32xf32>
    %111 = arith.subf %103, %110 : vector<8x32xf32>
    %112 = arith.mulf %111, %111 : vector<8x32xf32>
    %cst_42 = arith.constant dense<0.000000e+00> : vector<8xf32>
    %113 = vector.multi_reduction <add>, %112, %cst_42 [1] : vector<8x32xf32> to vector<8xf32>
    %114 = vector.shape_cast %113 : vector<8xf32> to vector<8x1xf32>
    %cst_43 = arith.constant 3.200000e+01 : f32
    %115 = vector.broadcast %cst_43 : f32 to vector<8x1xf32>
    %116 = arith.divf %114, %115 : vector<8x1xf32>
    %117 = vector.broadcast %109 : vector<8x1xf32> to vector<8x32xf32>
    %118 = arith.subf %103, %117 : vector<8x32xf32>
    %cst_44 = arith.constant 9.99999996E-13 : f32
    %119 = vector.broadcast %cst_44 : f32 to vector<8x1xf32>
    %120 = arith.addf %116, %119 : vector<8x1xf32>
    %121 = math.rsqrt %120 : vector<8x1xf32>
    %122 = vector.broadcast %121 : vector<8x1xf32> to vector<8x32xf32>
    %123 = arith.mulf %118, %122 : vector<8x32xf32>
    %124 = vector.broadcast %104 : vector<1x32xf32> to vector<8x32xf32>
    %125 = arith.mulf %123, %124 : vector<8x32xf32>
    %126 = vector.broadcast %105 : vector<1x32xf32> to vector<8x32xf32>
    %127 = arith.addf %125, %126 : vector<8x32xf32>
    %c0_45 = arith.constant 0 : index
    %c0_46 = arith.constant 0 : index
    %128 = vector.load %arg9[%c0_45, %c0_46] : memref<32x64xf32, #tpu.memory_space<vmem>>, vector<32x64xf32>
    %cst_47 = arith.constant dense<0.000000e+00> : vector<8x64xf32>
    %129 = tpu.matmul %127, %128, %cst_47 {dimension_numbers = #tpu.dot_dimension_numbers<[1], [0], [0], [1], [0, 0, 1, 1], [], []>} : vector<8x32xf32>, vector<32x64xf32>, vector<8x64xf32> -> vector<8x64xf32>
    %c0_48 = arith.constant 0 : index
    %c0_49 = arith.constant 0 : index
    %130 = vector.load %arg10[%c0_48, %c0_49] : memref<1x64xf32, #tpu.memory_space<vmem>>, vector<1x64xf32>
    %131 = vector.broadcast %130 : vector<1x64xf32> to vector<8x64xf32>
    %132 = arith.addf %129, %131 : vector<8x64xf32>
    %cst_50 = arith.constant 5.000000e-01 : f32
    %133 = vector.broadcast %cst_50 : f32 to vector<8x64xf32>
    %134 = arith.mulf %133, %132 : vector<8x64xf32>
    %cst_51 = arith.constant 0.707106769 : f32
    %135 = vector.broadcast %cst_51 : f32 to vector<8x64xf32>
    %136 = arith.mulf %132, %135 : vector<8x64xf32>
    %137 = math.erf %136 : vector<8x64xf32>
    %cst_52 = arith.constant 1.000000e+00 : f32
    %138 = vector.broadcast %cst_52 : f32 to vector<8x64xf32>
    %139 = arith.addf %138, %137 : vector<8x64xf32>
    %140 = arith.mulf %134, %139 : vector<8x64xf32>
    %c0_53 = arith.constant 0 : index
    %c0_54 = arith.constant 0 : index
    %141 = vector.load %arg11[%c0_53, %c0_54] : memref<64x32xf32, #tpu.memory_space<vmem>>, vector<64x32xf32>
    %cst_55 = arith.constant dense<0.000000e+00> : vector<8x32xf32>
    %142 = tpu.matmul %140, %141, %cst_55 {dimension_numbers = #tpu.dot_dimension_numbers<[1], [0], [0], [1], [0, 0, 1, 1], [], []>} : vector<8x64xf32>, vector<64x32xf32>, vector<8x32xf32> -> vector<8x32xf32>
    %c0_56 = arith.constant 0 : index
    %c0_57 = arith.constant 0 : index
    %143 = vector.load %arg12[%c0_56, %c0_57] : memref<1x32xf32, #tpu.memory_space<vmem>>, vector<1x32xf32>
    %144 = vector.broadcast %143 : vector<1x32xf32> to vector<8x32xf32>
    %145 = arith.addf %142, %144 : vector<8x32xf32>
    %146 = arith.addf %145, %127 : vector<8x32xf32>
    %c0_58 = arith.constant 0 : index
    %c0_59 = arith.constant 0 : index
    %147 = vector.load %arg13[%c0_58, %c0_59] : memref<1x32xf32, #tpu.memory_space<vmem>>, vector<1x32xf32>
    %c0_60 = arith.constant 0 : index
    %c0_61 = arith.constant 0 : index
    %148 = vector.load %arg14[%c0_60, %c0_61] : memref<1x32xf32, #tpu.memory_space<vmem>>, vector<1x32xf32>
    %cst_62 = arith.constant dense<0.000000e+00> : vector<8xf32>
    %149 = vector.multi_reduction <add>, %146, %cst_62 [1] : vector<8x32xf32> to vector<8xf32>
    %150 = vector.shape_cast %149 : vector<8xf32> to vector<8x1xf32>
    %cst_63 = arith.constant 3.200000e+01 : f32
    %151 = vector.broadcast %cst_63 : f32 to vector<8x1xf32>
    %152 = arith.divf %150, %151 : vector<8x1xf32>
    %153 = vector.broadcast %152 : vector<8x1xf32> to vector<8x32xf32>
    %154 = arith.subf %146, %153 : vector<8x32xf32>
    %155 = arith.mulf %154, %154 : vector<8x32xf32>
    %cst_64 = arith.constant dense<0.000000e+00> : vector<8xf32>
    %156 = vector.multi_reduction <add>, %155, %cst_64 [1] : vector<8x32xf32> to vector<8xf32>
    %157 = vector.shape_cast %156 : vector<8xf32> to vector<8x1xf32>
    %cst_65 = arith.constant 3.200000e+01 : f32
    %158 = vector.broadcast %cst_65 : f32 to vector<8x1xf32>
    %159 = arith.divf %157, %158 : vector<8x1xf32>
    %160 = vector.broadcast %152 : vector<8x1xf32> to vector<8x32xf32>
    %161 = arith.subf %146, %160 : vector<8x32xf32>
    %cst_66 = arith.constant 9.99999996E-13 : f32
    %162 = vector.broadcast %cst_66 : f32 to vector<8x1xf32>
    %163 = arith.addf %159, %162 : vector<8x1xf32>
    %164 = math.rsqrt %163 : vector<8x1xf32>
    %165 = vector.broadcast %164 : vector<8x1xf32> to vector<8x32xf32>
    %166 = arith.mulf %161, %165 : vector<8x32xf32>
    %167 = vector.broadcast %147 : vector<1x32xf32> to vector<8x32xf32>
    %168 = arith.mulf %166, %167 : vector<8x32xf32>
    %169 = vector.broadcast %148 : vector<1x32xf32> to vector<8x32xf32>
    %170 = arith.addf %168, %169 : vector<8x32xf32>
    %c0_67 = arith.constant 0 : index
    %c0_68 = arith.constant 0 : index
    %171 = vector.load %arg17[%c0_67, %c0_68] : memref<8x32xf32, #tpu.memory_space<vmem>>, vector<8x32xf32>
    tpu.vector_store %arg17[%c0_67, %c0_68], %170 {strides = array<i32>} : memref<8x32xf32, #tpu.memory_space<vmem>>, vector<8x32xf32>,
    %172 = vector.extract_strided_slice %170 {offsets = [0, 0], sizes = [1, 32], strides = [1, 1]} : vector<8x32xf32> to vector<1x32xf32>
    %c0_69 = arith.constant 0 : index
    %c0_70 = arith.constant 0 : index
    %173 = vector.load %arg15[%c0_69, %c0_70] : memref<32x32xf32, #tpu.memory_space<vmem>>, vector<32x32xf32>
    %cst_71 = arith.constant dense<0.000000e+00> : vector<1x32xf32>
    %174 = tpu.matmul %172, %173, %cst_71 {dimension_numbers = #tpu.dot_dimension_numbers<[1], [0], [0], [1], [0, 0, 1, 1], [], []>} : vector<1x32xf32>, vector<32x32xf32>, vector<1x32xf32> -> vector<1x32xf32>
    %c0_72 = arith.constant 0 : index
    %c0_73 = arith.constant 0 : index
    %175 = vector.load %arg16[%c0_72, %c0_73] : memref<1x32xf32, #tpu.memory_space<vmem>>, vector<1x32xf32>
    %176 = arith.addf %174, %175 : vector<1x32xf32>
    %177 = math.tanh %176 : vector<1x32xf32>
    %c0_74 = arith.constant 0 : index
    %c0_75 = arith.constant 0 : index
    %c0_76 = arith.constant 0 : index
    %178 = vector.load %arg18[%c0_74, %c0_75, %c0_76] : memref<1x1x32xf32, #tpu.memory_space<vmem>>, vector<1x1x32xf32>
    %179 = vector.shape_cast %178 : vector<1x1x32xf32> to vector<1x32xf32>
    %180 = vector.shape_cast %177 : vector<1x32xf32> to vector<1x1x32xf32>
    tpu.vector_store %arg18[%c0_74, %c0_75, %c0_76], %180 {strides = array<i32>} : memref<1x1x32xf32, #tpu.memory_space<vmem>>, vector<1x1x32xf32>,
    return
  }
  func.func @transform_0(%arg0: i32) -> (i32, i32) {
    %c0_i32 = arith.constant 0 : i32
    %c0_i32_0 = arith.constant 0 : i32
    return %arg0, %c0_i32 : i32, i32
  }
  func.func @transform_1(%arg0: i32) -> (i32, i32, i32) {
    %c0_i32 = arith.constant 0 : i32
    %c0_i32_0 = arith.constant 0 : i32
    %c0_i32_1 = arith.constant 0 : i32
    return %arg0, %c0_i32, %c0_i32_0 : i32, i32, i32
  }
  func.func @transform_2(%arg0: i32) -> (i32, i32) {
    %c0_i32 = arith.constant 0 : i32
    %c0_i32_0 = arith.constant 0 : i32
    %c0_i32_1 = arith.constant 0 : i32
    return %c0_i32, %c0_i32_0 : i32, i32
  }
  func.func @transform_3(%arg0: i32) -> (i32, i32) {
    %c0_i32 = arith.constant 0 : i32
    %c0_i32_0 = arith.constant 0 : i32
    %c0_i32_1 = arith.constant 0 : i32
    return %c0_i32, %c0_i32_0 : i32, i32
  }
  func.func @transform_4(%arg0: i32) -> (i32, i32) {
    %c0_i32 = arith.constant 0 : i32
    %c0_i32_0 = arith.constant 0 : i32
    %c0_i32_1 = arith.constant 0 : i32
    return %c0_i32, %c0_i32_0 : i32, i32
  }
  func.func @transform_5(%arg0: i32) -> (i32, i32) {
    %c0_i32 = arith.constant 0 : i32
    %c0_i32_0 = arith.constant 0 : i32
    %c0_i32_1 = arith.constant 0 : i32
    return %c0_i32, %c0_i32_0 : i32, i32
  }
  func.func @transform_6(%arg0: i32) -> (i32, i32) {
    %c0_i32 = arith.constant 0 : i32
    %c0_i32_0 = arith.constant 0 : i32
    %c0_i32_1 = arith.constant 0 : i32
    return %c0_i32, %c0_i32_0 : i32, i32
  }
  func.func @transform_7(%arg0: i32) -> (i32, i32) {
    %c0_i32 = arith.constant 0 : i32
    %c0_i32_0 = arith.constant 0 : i32
    %c0_i32_1 = arith.constant 0 : i32
    return %c0_i32, %c0_i32_0 : i32, i32
  }
  func.func @transform_8(%arg0: i32) -> (i32, i32) {
    %c0_i32 = arith.constant 0 : i32
    %c0_i32_0 = arith.constant 0 : i32
    %c0_i32_1 = arith.constant 0 : i32
    return %c0_i32, %c0_i32_0 : i32, i32
  }
  func.func @transform_9(%arg0: i32) -> (i32, i32) {
    %c0_i32 = arith.constant 0 : i32
    %c0_i32_0 = arith.constant 0 : i32
    %c0_i32_1 = arith.constant 0 : i32
    return %c0_i32, %c0_i32_0 : i32, i32
  }
  func.func @transform_10(%arg0: i32) -> (i32, i32) {
    %c0_i32 = arith.constant 0 : i32
    %c0_i32_0 = arith.constant 0 : i32
    %c0_i32_1 = arith.constant 0 : i32
    return %c0_i32, %c0_i32_0 : i32, i32
  }
  func.func @transform_11(%arg0: i32) -> (i32, i32) {
    %c0_i32 = arith.constant 0 : i32
    %c0_i32_0 = arith.constant 0 : i32
    %c0_i32_1 = arith.constant 0 : i32
    return %c0_i32, %c0_i32_0 : i32, i32
  }
  func.func @transform_12(%arg0: i32) -> (i32, i32) {
    %c0_i32 = arith.constant 0 : i32
    %c0_i32_0 = arith.constant 0 : i32
    %c0_i32_1 = arith.constant 0 : i32
    return %c0_i32, %c0_i32_0 : i32, i32
  }
  func.func @transform_13(%arg0: i32) -> (i32, i32) {
    %c0_i32 = arith.constant 0 : i32
    %c0_i32_0 = arith.constant 0 : i32
    %c0_i32_1 = arith.constant 0 : i32
    return %c0_i32, %c0_i32_0 : i32, i32
  }
  func.func @transform_14(%arg0: i32) -> (i32, i32) {
    %c0_i32 = arith.constant 0 : i32
    %c0_i32_0 = arith.constant 0 : i32
    %c0_i32_1 = arith.constant 0 : i32
    return %c0_i32, %c0_i32_0 : i32, i32
  }
  func.func @transform_15(%arg0: i32) -> (i32, i32) {
    %c0_i32 = arith.constant 0 : i32
    %c0_i32_0 = arith.constant 0 : i32
    %c0_i32_1 = arith.constant 0 : i32
    return %c0_i32, %c0_i32_0 : i32, i32
  }
  func.func @transform_16(%arg0: i32) -> (i32, i32) {
    %c0_i32 = arith.constant 0 : i32
    %c0_i32_0 = arith.constant 0 : i32
    return %arg0, %c0_i32 : i32, i32
  }
  func.func @transform_17(%arg0: i32) -> (i32, i32, i32) {
    %c0_i32 = arith.constant 0 : i32
    %c0_i32_0 = arith.constant 0 : i32
    %c0_i32_1 = arith.constant 0 : i32
    return %arg0, %c0_i32, %c0_i32_0 : i32, i32, i32
  }
}

</mosaic_0001>

<bundles_post_ra>
// kernel: triplet_network_forward.2
= control target key start
LH: loop header
LB: loop body
LE: loop exit
PB: predicated region body
PF: predicated region fallthrough
CT: control target
= control target key end

     0   :  { %s2263_s21 = smov 0   ;;  %s2496_s0 = inlined_call_operand.vmem [shape: f32[16,32], index: 0, kind: input, shape index: {}]   ;;  %s2497_s1 = inlined_call_operand.vmem [shape: f32[2,1,8], index: 1, kind: input, shape index: {}]   ;;  %s2498_s2 = inlined_call_operand.vmem [shape: f32[1,32], index: 2, kind: input, shape index: {}]   ;;  %s2499_s3 = inlined_call_operand.vmem [shape: f32[1,32], index: 3, kind: input, shape index: {}]   ;;  %s2500_s4 = inlined_call_operand.vmem [shape: f32[32,96], index: 4, kind: input, shape index: {}]   ;;  %s2501_s5 = inlined_call_operand.vmem [shape: f32[1,96], index: 5, kind: input, shape index: {}]   ;;  %s2502_s6 = inlined_call_operand.vmem [shape: f32[32,32], index: 6, kind: input, shape index: {}]   ;;  %s2503_s7 = inlined_call_operand.vmem [shape: f32[1,32], index: 7, kind: input, shape index: {}]   ;;  %s2504_s8 = inlined_call_operand.vmem [shape: f32[1,32], index: 8, kind: input, shape index: {}]   ;;  %s2505_s9 = inlined_call_operand.vmem [shape: f32[1,32], index: 9, kind: input, shape index: {}]   ;;  %s2506_s10 = inlined_call_operand.vmem [shape: f32[32,64], index: 10, kind: input, shape index: {}]   ;;  %s2507_s11 = inlined_call_operand.vmem [shape: f32[1,64], index: 11, kind: input, shape index: {}]   ;;  %s2508_s12 = inlined_call_operand.vmem [shape: f32[64,32], index: 12, kind: input, shape index: {}]   ;;  %s2509_s13 = inlined_call_operand.vmem [shape: f32[1,32], index: 13, kind: input, shape index: {}]   ;;  %s2510_s14 = inlined_call_operand.vmem [shape: f32[1,32], index: 14, kind: input, shape index: {}]   ;;  %s2511_s15 = inlined_call_operand.vmem [shape: f32[1,32], index: 15, kind: input, shape index: {}]   ;;  %s2512_s16 = inlined_call_operand.vmem [shape: f32[16,32], index: 16, kind: output, shape index: {}]  }
   0x1   :  { %2513 = sst [smem:[#allocation2_spill]] %s2496_s0 }
   0x2 LB: > { %s1929_s22 = sadd.s32 4294967295, %s2163_s21   ;;  %p1933_p0 = scmp.ge.s32.totalorder %s2163_s21, 1  ;;  %s2163_s21 = sphi %s2263_s21, %s26_s21  }
   0x3   : > { %p469_p1 = scmp.lt.s32.totalorder %s2163_s21, 3 }
   0x5   : > { %p470_p2 = pnand %p1933_p0, %p469_p1 }
   0x6   : > { %p520_p3 = scmp.lt.s32.totalorder (!%p470_p2), %s1929_s22, 1  ;;  %s2514_s26 = sld [smem:[#allocation2_spill]] (!%p470_p2) }
   0x7   : > { %473 = sbr.rel (%p470_p2) target bundleno = 3790 (0xece), region = 84  ;;  %s2167_s30 = smov (!%p470_p2), 120  }
   0x8   : > { %s2168_s0 = smov (!%p470_p2), 96   ;;  %s2169_s17 = smov (!%p470_p2), 88  }
   0x9   : > { %s2170_s24 = smov (!%p470_p2), 56   ;;  %s2171_s25 = smov (!%p470_p2), 64  }
   0xa   : > { %s2175_s18 = smov (!%p470_p2), 104   ;;  %s2176_s19 = smov (!%p470_p2), 72  }
   0xc   : > { %s2516_s22 = smov (!%p520_p3, %s1929_s22), 1  ;;  %vm534_vm0 = vcmask 261120   ;;  %v566_v7 = vld [vmem:[%s2500_s4 + $0x18] sm:$0xff]  ;;  %v2165_v8 = vmov 0.0   ;;  %v565_v9 = vld [vmem:[%s2500_s4 + $0x10] sm:$0xff]  ;;  %vm2166_vm1 = vmmov 0  }
   0xd   : > { %s1934_s23 = sshll.u32 %s2516_s22, 3  ;;  %2011 = vmatprep.subr.mxu0 %v2165_v8  ;;  %2019 = vmatprep.mubr.msk.f32.mxu0 %vm2166_vm1, %v2165_v8  ;;  %v564_v10 = vld [vmem:[%s2500_s4 + $0x8] sm:$0xff]  ;;  %v563_v11 = vld [vmem:[%s2500_s4] sm:$0xff]  ;;  %vm655_vm2 = vcmask 64512   ;;  %s526_s20 = scalar_lea.vmem %s2497_s1, %s2516_s22  ;;  %vm1762_vm3 = vcmask 523264  }
   0xe   : > { %s523_s27 = scalar_lea.vmem %s2514_s26, %s1934_s23  ;;  %2012 = vmatpush3.msra.mxu0 %v566_v7  ;;  %2027 = vmatprep.subr.mxu1 %v2165_v8  ;;  %v1936_v16 = vld [vmem:[%s2498_s2] ss:$0 sm:$0xff]  ;;  %s2172_s26 = smov 80   ;;  %v649_v58 = vld [vmem:[%s2502_s6 + $0x8] sm:$0xff] }
   0xf   : > { %v531_v0 = vld [vmem:[%s523_s27] sm:$0xff]  ;;  %2013 = vmatprep.subr.mxu0 %v2165_v8  ;;  %2029 = vmatprep.mubr.msk.f32.mxu1 %vm2166_vm1, %v2165_v8  ;;  %s2173_s27 = smov 112  }
  0x10   : > { %v535_v1 = vsel %vm534_vm0, %v531_v0, 0.0  ;;  %2014 = vmatpush3.msra.mxu0 %v565_v9  ;;  %v1937_v18 = vld [vmem:[%s2499_s3] ss:$0 sm:$0xff] }
  0x11   : > { %536 = vadd.xlane.f32.xlu0 %v535_v1  ;;  %2015 = vmatprep.subr.mxu0 %v2165_v8  ;;  %v1938_v21 = vld [vmem:[%s2501_s5] ss:$0 sm:$0xff] }
  0x12   : > { %2016 = vmatpush3.msra.mxu0 %v564_v10  ;;  %v2338_v28 = vld [vmem:[%s526_s20] ss:$0 sm:$0xff] }
  0x13   : > { %2017 = vmatprep.subr.mxu0 %v2165_v8  ;;  %v648_v57 = vld [vmem:[%s2502_s6] sm:$0xff] }
  0x14   : > { %2018 = vmatpush3.msra.mxu0 %v563_v11 }
  0x15   : > { %2022 = vmatprep.subr.mxu0 %v2165_v8 }
  0x9a   : > { %v537_v2 = vpop.xlane.xlu0 %536 }
  0x9b   : > { %v539_v3 = vmul.f32 0.03125, %v537_v2 }
  0x9d   : > { %v540_v4 = vsub.f32 %v531_v0, %v539_v3 }
  0x9f   : > { %v541_v5 = vmul.f32 %v540_v4, %v540_v4 }
  0xa1   : > { %v542_v6 = vsel %vm534_vm0, %v541_v5, 0.0 }
  0xa2   : > { %543 = vadd.xlane.f32.xlu0 %v542_v6 }
 0x12b   : > { %v544_v12 = vpop.xlane.xlu0 %543 }
 0x12c   : > { %v545_v13 = vmul.f32 0.03125, %v544_v12 }
 0x12e   : > { %v546_v14 = vadd.f32 1e-12, %v545_v13 }
 0x130   : > { %2133 = vrsqrt.f32 %v546_v14 }
 0x13d   : > { %v2134_v15 = vpop.eup %2133 }
 0x13e   : > { %v548_v17 = vmul.f32 %v2134_v15, %v540_v4 }
 0x140   : > { %v555_v19 = vmul.f32 %v1936_v16, %v548_v17 }
 0x142   : > { %v2309_v20 = vadd.f32 %v1937_v18, %v555_v19 }
 0x144   : > { %2020 = vmatmul.mubr.msk.f32.vlgmr.msra.gmra.mxu0 %vm534_vm0, %v2309_v20 }
 0x145   : > { %2024 = vmatprep.mubr.msk.f32.mxu0 %vm2166_vm1, %v2165_v8 }
 0x204   : > { %v643_v22 = vpop.f32.mrf.mxu0 }
 0x205   : > { %v2318_v23 = vadd.f32 %v1938_v21, %v643_v22 }
 0x206   : > { %v2021_v24 = vpop.f32.mrf.mxu0 }
 0x207   : > { %825 = vrot.lane.b32.xlu0 %v2318_v23, %s2167_s30  ;;  %653 = vrot.lane.b32.xlu1 %v2318_v23, %s2168_s0 }
 0x20b   : > { %827 = vrot.lane.b32.xlu1 %v2318_v23, %s2169_s17  ;;  %s2174_s17 = smov 48  }
 0x279   : > { %v654_v25 = vpop.permute.xlu1 %653  ;;  %v826_v27 = vpop.permute.xlu0 %825 }
 0x27a   : > { %2023 = vmatpush3.xpose.msk.msra.mxu0 %vm655_vm2, %v654_v25  ;;  %v650_v25 = vld [vmem:[%s2502_s6 + $0x10] sm:$0xff] }
 0x27b   : > { %2032 = vmatprep.subr.mxu0 %v2165_v8 }
 0x27d   : > { %2025 = vmatmul.mubr.msk.f32.vlgmr.msra.gmra.mxu0 %vm655_vm2, %v2318_v23  ;;  %v828_v26 = vpop.permute.xlu1 %827 }
 0x27e   : > { %2033 = vmatpush3.xpose.msk.msra.mxu0 %vm655_vm2, %v828_v26  ;;  %2034 = vmatprep.mubr.msk.f32.mxu0 %vm2166_vm1, %v2165_v8 }
 0x27f   : > { %2042 = vmatprep.subr.mxu0 %v2165_v8 }
 0x281   : > { %2035 = vmatmul.mubr.msk.f32.vlgmr.msra.gmra.mxu0 %vm655_vm2, %v826_v27 }
 0x282   : > { %2044 = vmatprep.mubr.msk.f32.mxu0 %vm2166_vm1, %v2165_v8  ;;  %2043 = vmatpush3.msra.mxu0 %v649_v58 }
 0x283   : > { %2052 = vmatprep.subr.mxu0 %v2165_v8 }
 0x33d   : > { %v726_v29 = vpop.f32.mrf.mxu0 }
 0x33e   : > { %v730_v30 = vmul.f32 0.35355338, %v726_v29 }
 0x33f   : > { %v2026_v31 = vpop.f32.mrf.mxu0 }
 0x340   : > { %v737_v32 = vadd.f32 %v2338_v28, %v730_v30 }
 0x341   : > { %v899_v33 = vpop.f32.mrf.mxu0 }
 0x342   : > { %v903_v34 = vmul.f32 0.35355338, %v899_v33  ;;  %v738_v35 = vsel %vm655_vm2, %v737_v32, -inf }
 0x343   : > { %739 = vmax.xlane.f32.xlu1 %v738_v35  ;;  %v2036_v36 = vpop.f32.mrf.mxu0 }
 0x344   : > { %v904_v37 = vadd.f32 %v2338_v28, %v903_v34 }
 0x346   : > { %v905_v38 = vsel %vm655_vm2, %v904_v37, -inf }
 0x347   : > { %906 = vmax.xlane.f32.xlu0 %v905_v38 }
 0x35d   : > { %916 = vrot.lane.b32.xlu0 %v2318_v23, %s2170_s24 }
 0x3cc   : > { %v740_v39 = vpop.xlane.xlu1 %739 }
 0x3cd   : > { %v741_v40 = vsub.f32 %v737_v32, %v740_v39 }
 0x3cf   : > { %v742_v41 = vmul.f32 1.442695, %v741_v40  ;;  %v651_v40 = vld [vmem:[%s2502_s6 + $0x18] sm:$0xff] }
 0x3d0   : > { %v907_v42 = vpop.xlane.xlu0 %906 }
 0x3d1   : > { %2135 = vpow2.f32 %v742_v41  ;;  %v908_v43 = vsub.f32 %v904_v37, %v907_v42 }
 0x3d3   : > { %v909_v44 = vmul.f32 1.442695, %v908_v43 }
 0x3d4   : > { %v917_v54 = vpop.permute.xlu0 %916 }
 0x3d5   : > { %2137 = vpow2.f32 %v909_v44 }
 0x3de   : > { %v2136_v45 = vpop.eup %2135 }
 0x3df   : > { %v744_v46 = vsel %vm655_vm2, %v2136_v45, 0.0 }
 0x3e0   : > { %745 = vadd.xlane.f32.xlu1 %v744_v46 }
 0x3e2   : > { %v2138_v47 = vpop.eup %2137 }
 0x3e3   : > { %v911_v48 = vsel %vm655_vm2, %v2138_v47, 0.0 }
 0x3e4   : > { %912 = vadd.xlane.f32.xlu1 %v911_v48  ;;  %v1957_v48 = vld [vmem:[%s2503_s7] ss:$0 sm:$0xff] }
 0x3f5   : > { %749 = vrot.lane.b32.xlu1 %v2318_v23, %s2171_s25  ;;  %s2177_s25 = smov 40  }
 0x3f9   : > { %1140 = vrot.lane.b32.xlu1 %v2318_v23, %s2172_s26 }
 0x3fd   : > { %1138 = vrot.lane.b32.xlu1 %v2318_v23, %s2173_s27 }
 0x469   : > { %v746_v49 = vpop.xlane.xlu1 %745 }
 0x46a   : > { %2139 = vrcp.f32 %v746_v49 }
 0x46d   : > { %v913_v50 = vpop.xlane.xlu1 %912 }
 0x46e   : > { %2141 = vrcp.f32 %v913_v50 }
 0x471   : > { %v750_v51 = vpop.permute.xlu1 %749 }
 0x472   : > { %2028 = vmatpush3.msra.mxu1 %v750_v51 }
 0x473   : > { %2037 = vmatprep.subr.mxu1 %v2165_v8 }
 0x475   : > { %v1141_v60 = vpop.permute.xlu1 %1140 }
 0x477   : > { %v2140_v52 = vpop.eup %2139 }
 0x478   : > { %v748_v53 = vmul.f32 %v2140_v52, %v2136_v45 }
 0x479   : > { %v1139_v0 = vpop.permute.xlu1 %1138 }
 0x47a   : > { %2030 = vmatmul.mubr.msk.f32.vlgmr.msra.gmra.mxu1 %vm655_vm2, %v748_v53 }
 0x47b   : > { %v2142_v55 = vpop.eup %2141  ;;  %2038 = vmatpush3.msra.mxu1 %v917_v54  ;;  %2039 = vmatprep.mubr.msk.f32.mxu1 %vm2166_vm1, %v2165_v8 }
 0x47c   : > { %v915_v56 = vmul.f32 %v2142_v55, %v2138_v47  ;;  %2047 = vmatprep.subr.mxu1 %v2165_v8 }
 0x47e   : > { %2040 = vmatmul.mubr.msk.f32.vlgmr.msra.gmra.mxu1 %vm655_vm2, %v915_v56 }
 0x47f   : > { %2049 = vmatprep.mubr.msk.f32.mxu1 %vm2166_vm1, %v2165_v8  ;;  %2048 = vmatpush3.msra.mxu1 %v648_v57 }
 0x480   : > { %2057 = vmatprep.subr.mxu1 %v2165_v8 }
 0x53a   : > { %v821_v59 = vpop.f32.mrf.mxu1 }
 0x53b   : > { %2050 = vmatmul.mubr.msk.f32.vlgmr.msra.gmra.mxu1 %vm655_vm2, %v821_v59  ;;  %v1661_v59 = vld [vmem:[%s2506_s10 + $0x18] sm:$0xff] }
 0x53c   : > { %v2031_v61 = vpop.f32.mrf.mxu1  ;;  %2059 = vmatprep.mubr.msk.f32.mxu1 %vm2166_vm1, %v2165_v8 }
 0x53d   : > { %v1658_v61 = vld [vmem:[%s2506_s10] sm:$0xff] }
 0x53e   : > { %v988_v62 = vpop.f32.mrf.mxu1 }
 0x53f   : > { %2045 = vmatmul.mubr.msk.f32.vlgmr.msra.gmra.mxu0 %vm655_vm2, %v988_v62 }
 0x540   : > { %2053 = vmatpush3.xpose.msk.msra.mxu0 %vm655_vm2, %v1141_v60  ;;  %v2041_v63 = vpop.f32.mrf.mxu1  ;;  %2054 = vmatprep.mubr.msk.f32.mxu0 %vm2166_vm1, %v2165_v8  ;;  %v1660_v60 = vld [vmem:[%s2506_s10 + $0x10] sm:$0xff] }
 0x541   : > { %2062 = vmatprep.subr.mxu0 %v2165_v8 }
 0x543   : > { %2055 = vmatmul.mubr.msk.f32.vlgmr.msra.gmra.mxu0 %vm655_vm2, %v1139_v0 }
 0x544   : > { %2064 = vmatprep.mubr.msk.f32.mxu0 %vm2166_vm1, %v2165_v8  ;;  %2063 = vmatpush3.msra.mxu0 %v650_v25 }
 0x545   : > { %2072 = vmatprep.subr.mxu0 %v2165_v8 }
 0x5fb   : > { %v1134_v1 = vpop.f32.mrf.mxu1 }
 0x5fd   : > { %v2051_v2 = vpop.f32.mrf.mxu1 }
 0x5fe   : > { %v1958_v2 = vld [vmem:[%s2504_s8] ss:$0 sm:$0xff] }
 0x5ff   : > { %v1061_v3 = vpop.f32.mrf.mxu0 }
 0x600   : > { %v1135_v4 = vadd.f32 %v1134_v1, %v1061_v3 }
 0x601   : > { %v2046_v5 = vpop.f32.mrf.mxu0 }
 0x603   : > { %v1212_v6 = vpop.f32.mrf.mxu0 }
 0x604   : > { %v1216_v7 = vmul.f32 0.35355338, %v1212_v6 }
 0x605   : > { %v2056_v9 = vpop.f32.mrf.mxu0 }
 0x606   : > { %v1217_v10 = vadd.f32 %v2338_v28, %v1216_v7  ;;  %v1754_v7 = vld [vmem:[%s2508_s12 + $0x38] sm:$0xff]  ;;  %v1753_v9 = vld [vmem:[%s2508_s12 + $0x30] sm:$0xff] }
 0x608   : > { %v1218_v11 = vsel %vm655_vm2, %v1217_v10, -inf }
 0x609   : > { %1219 = vmax.xlane.f32.xlu1 %v1218_v11  ;;  %v1751_v11 = vld [vmem:[%s2508_s12 + $0x20] sm:$0xff] }
 0x61a   : > { %1229 = vrot.lane.b32.xlu1 %v2318_v23, %s2174_s17  ;;  %s530_s17 = scalar_lea.vmem %s2512_s16, %s1934_s23 }
 0x61e   : > { %1379 = vrot.lane.b32.xlu1 %v2318_v23, %s2175_s18 }
 0x692   : > { %v1220_v12 = vpop.xlane.xlu1 %1219 }
 0x693   : > { %v1221_v13 = vsub.f32 %v1217_v10, %v1220_v12  ;;  %v1752_v10 = vld [vmem:[%s2508_s12 + $0x28] sm:$0xff]  ;;  %v1750_v12 = vld [vmem:[%s2508_s12 + $0x18] sm:$0xff] }
 0x695   : > { %v1222_v14 = vmul.f32 1.442695, %v1221_v13  ;;  %v1749_v13 = vld [vmem:[%s2508_s12 + $0x10] sm:$0xff] }
 0x696   : > { %v1230_v15 = vpop.permute.xlu1 %1229 }
 0x697   : > { %2143 = vpow2.f32 %v1222_v14  ;;  %2058 = vmatpush3.msra.mxu1 %v1230_v15  ;;  %v1748_v14 = vld [vmem:[%s2508_s12 + $0x8] sm:$0xff]  ;;  %v1747_v15 = vld [vmem:[%s2508_s12] sm:$0xff] }
 0x698   : > { %2067 = vmatprep.subr.mxu1 %v2165_v8 }
 0x69a   : > { %v1380_v24 = vpop.permute.xlu1 %1379 }
 0x6a4   : > { %v2144_v16 = vpop.eup %2143 }
 0x6a5   : > { %v1224_v17 = vsel %vm655_vm2, %v2144_v16, 0.0 }
 0x6a6   : > { %1225 = vadd.xlane.f32.xlu0 %v1224_v17 }
 0x6bc   : > { %1381 = vrot.lane.b32.xlu0 %v2318_v23, %s2176_s19 }
 0x72f   : > { %v1226_v18 = vpop.xlane.xlu0 %1225 }
 0x730   : > { %2145 = vrcp.f32 %v1226_v18 }
 0x733   : > { %v1382_v22 = vpop.permute.xlu0 %1381 }
 0x73d   : > { %v2146_v19 = vpop.eup %2145 }
 0x73e   : > { %v1228_v21 = vmul.f32 %v2146_v19, %v2144_v16  ;;  %v1960_v16 = vld [vmem:[%s2507_s11] ss:$0 sm:$0xff] }
 0x740   : > { %2060 = vmatmul.mubr.msk.f32.vlgmr.msra.gmra.mxu1 %vm655_vm2, %v1228_v21 }
 0x741   : > { %2068 = vmatpush3.xpose.msk.msra.mxu1 %vm655_vm2, %v1382_v22  ;;  %2069 = vmatprep.mubr.msk.f32.mxu1 %vm2166_vm1, %v2165_v8 }
 0x742   : > { %2077 = vmatprep.subr.mxu1 %v2165_v8 }
 0x744   : > { %2070 = vmatmul.mubr.msk.f32.vlgmr.msra.gmra.mxu1 %vm655_vm2, %v1380_v24 }
 0x745   : > { %2079 = vmatprep.mubr.msk.f32.mxu1 %vm2166_vm1, %v2165_v8  ;;  %2078 = vmatpush3.msra.mxu1 %v651_v40 }
 0x746   : > { %2093 = vmatprep.subr.mxu1 %v2165_v8 }
 0x800   : > { %v1301_v26 = vpop.f32.mrf.mxu1 }
 0x801   : > { %2065 = vmatmul.mubr.msk.f32.vlgmr.msra.gmra.mxu0 %vm655_vm2, %v1301_v26 }
 0x802   : > { %v2061_v27 = vpop.f32.mrf.mxu1  ;;  %2074 = vmatprep.mubr.msk.f32.mxu0 %vm2166_vm1, %v2165_v8 }
 0x804   : > { %v1453_v29 = vpop.f32.mrf.mxu1 }
 0x805   : > { %v1457_v30 = vmul.f32 0.35355338, %v1453_v29 }
 0x806   : > { %v2071_v31 = vpop.f32.mrf.mxu1 }
 0x807   : > { %v1458_v32 = vadd.f32 %v2338_v28, %v1457_v30 }
 0x809   : > { %v1459_v33 = vsel %vm655_vm2, %v1458_v32, -inf }
 0x80a   : > { %1460 = vmax.xlane.f32.xlu1 %v1459_v33 }
 0x893   : > { %v1461_v34 = vpop.xlane.xlu1 %1460 }
 0x894   : > { %v1462_v35 = vsub.f32 %v1458_v32, %v1461_v34 }
 0x896   : > { %v1463_v36 = vmul.f32 1.442695, %v1462_v35 }
 0x898   : > { %2147 = vpow2.f32 %v1463_v36 }
 0x8a5   : > { %v2148_v37 = vpop.eup %2147 }
 0x8a6   : > { %v1465_v38 = vsel %vm655_vm2, %v2148_v37, 0.0 }
 0x8a7   : > { %1466 = vadd.xlane.f32.xlu0 %v1465_v38 }
 0x8bd   : > { %1470 = vrot.lane.b32.xlu0 %v2318_v23, %s2177_s25 }
 0x8c1   : > { %v1374_v39 = vpop.f32.mrf.mxu0 }
 0x8c2   : > { %v1378_v28 = vadd.f32 %v1374_v39, %v1135_v4  ;;  %v1959_v4 = vld [vmem:[%s2505_s9] ss:$0 sm:$0xff] }
 0x8c3   : > { %v2066_v41 = vpop.f32.mrf.mxu0 }
 0x8c4   : > { %v1964_v41 = vld [vmem:[%s2510_s14] ss:$0 sm:$0xff] }
 0x930   : > { %v1467_v42 = vpop.xlane.xlu0 %1466 }
 0x931   : > { %2149 = vrcp.f32 %v1467_v42 }
 0x934   : > { %v1471_v43 = vpop.permute.xlu0 %1470 }
 0x935   : > { %2073 = vmatpush3.msra.mxu0 %v1471_v43  ;;  %v1965_v43 = vld [vmem:[%s2511_s15] ss:$0 sm:$0xff] }
 0x936   : > { %2082 = vmatprep.subr.mxu0 %v2165_v8 }
 0x93e   : > { %v2150_v44 = vpop.eup %2149 }
 0x93f   : > { %v1469_v45 = vmul.f32 %v2150_v44, %v2148_v37 }
 0x941   : > { %2075 = vmatmul.mubr.msk.f32.vlgmr.msra.gmra.mxu0 %vm655_vm2, %v1469_v45 }
 0x942   : > { %2090 = vmatprep.mubr.msk.f32.mxu0 %vm2166_vm1, %v2165_v8  ;;  %2083 = vmatpush3.msra.mxu0 %v1661_v59 }
 0x943   : > { %2084 = vmatprep.subr.mxu0 %v2165_v8 }
 0x944   : > { %2085 = vmatpush3.msra.mxu0 %v1660_v60 }
 0x945   : > { %2086 = vmatprep.subr.mxu0 %v2165_v8 }
 0xa01   : > { %v1542_v23 = vpop.f32.mrf.mxu0 }
 0xa02   : > { %2080 = vmatmul.mubr.msk.f32.vlgmr.msra.gmra.mxu1 %vm655_vm2, %v1542_v23 }
 0xa03   : > { %v2076_v46 = vpop.f32.mrf.mxu0  ;;  %2109 = vmatprep.mubr.msk.f32.mxu1 %vm2166_vm1, %v2165_v8  ;;  %2094 = vmatpush3.msra.mxu1 %v1754_v7 }
 0xa04   : > { %2095 = vmatprep.subr.mxu1 %v2165_v8 }
 0xa05   : > { %2096 = vmatpush3.msra.mxu1 %v1753_v9 }
 0xa06   : > { %2097 = vmatprep.subr.mxu1 %v2165_v8 }
 0xa07   : > { %2098 = vmatpush3.msra.mxu1 %v1752_v10 }
 0xa08   : > { %2099 = vmatprep.subr.mxu1 %v2165_v8 }
 0xa09   : > { %2100 = vmatpush3.msra.mxu1 %v1751_v11 }
 0xa0a   : > { %2101 = vmatprep.subr.mxu1 %v2165_v8 }
 0xa0b   : > { %2102 = vmatpush3.msra.mxu1 %v1750_v12 }
 0xa0c   : > { %2103 = vmatprep.subr.mxu1 %v2165_v8 }
 0xa0d   : > { %2104 = vmatpush3.msra.mxu1 %v1749_v13 }
 0xa0e   : > { %2105 = vmatprep.subr.mxu1 %v2165_v8 }
 0xa0f   : > { %2106 = vmatpush3.msra.mxu1 %v1748_v14 }
 0xa10   : > { %2107 = vmatprep.subr.mxu1 %v2165_v8 }
 0xa11   : > { %2108 = vmatpush3.msra.mxu1 %v1747_v15 }
 0xac2   : > { %v1615_v47 = vpop.f32.mrf.mxu1 }
 0xac3   : > { %v1619_v49 = vadd.f32 %v1615_v47, %v1378_v28 }
 0xac4   : > { %v2081_v50 = vpop.f32.mrf.mxu1 }
 0xac5   : > { %v1627_v51 = vadd.f32 %v1957_v48, %v1619_v49 }
 0xac7   : > { %v1628_v52 = vadd.f32 %v1627_v51, %v2309_v20  ;;  %v1659_v20 = vld [vmem:[%s2506_s10 + $0x8] sm:$0xff] }
 0xac8   : > { %2087 = vmatpush3.msra.mxu0 %v1659_v20 }
 0xac9   : > { %v1631_v53 = vsel %vm534_vm0, %v1628_v52, 0.0  ;;  %2088 = vmatprep.subr.mxu0 %v2165_v8  ;;  %v1962_v8 = vld [vmem:[%s2509_s13] ss:$0 sm:$0xff] }
 0xaca   : > { %1632 = vadd.xlane.f32.xlu1 %v1631_v53  ;;  %2089 = vmatpush3.msra.mxu0 %v1658_v61 }
 0xb53   : > { %v1633_v54 = vpop.xlane.xlu1 %1632 }
 0xb54   : > { %v1634_v55 = vmul.f32 0.03125, %v1633_v54 }
 0xb56   : > { %v1635_v56 = vsub.f32 %v1628_v52, %v1634_v55 }
 0xb58   : > { %v1636_v57 = vmul.f32 %v1635_v56, %v1635_v56 }
 0xb5a   : > { %v1637_v58 = vsel %vm534_vm0, %v1636_v57, 0.0 }
 0xb5b   : > { %1638 = vadd.xlane.f32.xlu1 %v1637_v58 }
 0xbe4   : > { %v1639_v62 = vpop.xlane.xlu1 %1638 }
 0xbe5   : > { %v1640_v63 = vmul.f32 0.03125, %v1639_v62 }
 0xbe7   : > { %v1641_v0 = vadd.f32 1e-12, %v1640_v63 }
 0xbe9   : > { %2151 = vrsqrt.f32 %v1641_v0 }
 0xbf6   : > { %v2152_v1 = vpop.eup %2151 }
 0xbf7   : > { %v1643_v3 = vmul.f32 %v2152_v1, %v1635_v56 }
 0xbf9   : > { %v1650_v5 = vmul.f32 %v1958_v2, %v1643_v3 }
 0xbfb   : > { %v1657_v6 = vadd.f32 %v1959_v4, %v1650_v5 }
 0xbfd   : > { %2091 = vmatmul.mubr.msk.f32.vlgmr.msra.gmra.mxu0 %vm534_vm0, %v1657_v6 }
 0xcbd   : > { %v1738_v17 = vpop.f32.mrf.mxu0 }
 0xcbe   : > { %v1739_v18 = vadd.f32 %v1960_v16, %v1738_v17 }
 0xcbf   : > { %v2092_v19 = vpop.f32.mrf.mxu0 }
 0xcc0   : > { %v1743_v21 = vmul.f32 0.70710677, %v1739_v18  ;;  %v1742_v24 = vmul.f32 0.5, %v1739_v18 }
 0xcc2   : > { %2153 = verf.f32 %v1743_v21 }
 0xccf   : > { %v2154_v22 = vpop.eup %2153 }
 0xcd0   : > { %v1745_v25 = vadd.f32 1.0, %v2154_v22 }
 0xcd2   : > { %v1746_v26 = vmul.f32 %v1745_v25, %v1742_v24 }
 0xcd4   : > { %2110 = vmatmul.mubr.msk.f32.vlgmr.msra.gmra.mxu1 %vm1762_vm3, %v1746_v26 }
 0xd94   : > { %v1832_v27 = vpop.f32.mrf.mxu1 }
 0xd95   : > { %v1833_v29 = vadd.f32 %v1962_v8, %v1832_v27 }
 0xd96   : > { %v2111_v30 = vpop.f32.mrf.mxu1 }
 0xd97   : > { %v1836_v31 = vadd.f32 %v1833_v29, %v1657_v6 }
 0xd99   : > { %v1839_v32 = vsel %vm534_vm0, %v1836_v31, 0.0 }
 0xd9a   : > { %1840 = vadd.xlane.f32.xlu1 %v1839_v32 }
 0xe23   : > { %v1841_v33 = vpop.xlane.xlu1 %1840 }
 0xe24   : > { %v1842_v34 = vmul.f32 0.03125, %v1841_v33 }
 0xe26   : > { %v1843_v35 = vsub.f32 %v1836_v31, %v1842_v34 }
 0xe28   : > { %v1844_v36 = vmul.f32 %v1843_v35, %v1843_v35 }
 0xe2a   : > { %v1845_v37 = vsel %vm534_vm0, %v1844_v36, 0.0 }
 0xe2b   : > { %1846 = vadd.xlane.f32.xlu1 %v1845_v37 }
 0xeb4   : > { %v1847_v38 = vpop.xlane.xlu1 %1846 }
 0xeb5   : > { %v1848_v39 = vmul.f32 0.03125, %v1847_v38 }
 0xeb7   : > { %v1849_v40 = vadd.f32 1e-12, %v1848_v39 }
 0xeb9   : > { %2155 = vrsqrt.f32 %v1849_v40 }
 0xec6   : > { %v2156_v28 = vpop.eup %2155 }
 0xec7   : > { %v1851_v42 = vmul.f32 %v2156_v28, %v1843_v35 }
 0xec9   : > { %v1858_v44 = vmul.f32 %v1964_v41, %v1851_v42 }
 0xecb   : > { %v1865_v45 = vadd.f32 %v1965_v43, %v1858_v44 }
 0xecd   : > { %1866 = vst.msk [vmem:[%s530_s17] sm:$0xff] %vm534_vm0, %v1865_v45 }
 0xece PF: > { %s26_s21 = sadd.s32 1, %s2163_s21  }
 0xecf   : > { %p23_p4 = scmp.ge.s32.totalorder %s26_s21, 4  }
 0xed1   :  { %25 = sbr.rel (!%p23_p4) target bundleno = 2 (0x2), region = 117 }

// kernel: triplet_network_forward.3
= control target key start
LH: loop header
LB: loop body
LE: loop exit
PB: predicated region body
PF: predicated region fallthrough
CT: control target
= control target key end

     0   :  { %s2905_s0 = inlined_call_operand.vmem [shape: f32[16,32], index: 0, kind: input, shape index: {}]   ;;  %s2906_s1 = inlined_call_operand.vmem [shape: f32[2,1,8], index: 1, kind: input, shape index: {}]   ;;  %s2907_s2 = inlined_call_operand.vmem [shape: f32[32,96], index: 2, kind: input, shape index: {}]   ;;  %s2908_s3 = inlined_call_operand.vmem [shape: f32[1,96], index: 3, kind: input, shape index: {}]   ;;  %s2909_s4 = inlined_call_operand.vmem [shape: f32[32,32], index: 4, kind: input, shape index: {}]   ;;  %s2910_s5 = inlined_call_operand.vmem [shape: f32[1,32], index: 5, kind: input, shape index: {}]   ;;  %s2911_s6 = inlined_call_operand.vmem [shape: f32[1,32], index: 6, kind: input, shape index: {}]   ;;  %s2912_s7 = inlined_call_operand.vmem [shape: f32[1,32], index: 7, kind: input, shape index: {}]   ;;  %s2913_s8 = inlined_call_operand.vmem [shape: f32[32,64], index: 8, kind: input, shape index: {}]   ;;  %s2914_s9 = inlined_call_operand.vmem [shape: f32[1,64], index: 9, kind: input, shape index: {}]   ;;  %s2915_s10 = inlined_call_operand.vmem [shape: f32[64,32], index: 10, kind: input, shape index: {}]   ;;  %s2916_s11 = inlined_call_operand.vmem [shape: f32[1,32], index: 11, kind: input, shape index: {}]   ;;  %s2917_s12 = inlined_call_operand.vmem [shape: f32[1,32], index: 12, kind: input, shape index: {}]   ;;  %s2918_s13 = inlined_call_operand.vmem [shape: f32[1,32], index: 13, kind: input, shape index: {}]   ;;  %s2919_s14 = inlined_call_operand.vmem [shape: f32[32,32], index: 14, kind: input, shape index: {}]   ;;  %s2920_s15 = inlined_call_operand.vmem [shape: f32[1,32], index: 15, kind: input, shape index: {}]   ;;  %s2921_s16 = inlined_call_operand.hbm [shape: f32[16,32], index: 16, kind: output, shape index: {0}]   ;;  %s2922_s17 = inlined_call_operand.hbm [shape: f32[2,1,32], index: 17, kind: output, shape index: {1}]  }
   0x1   :  { %2927 = sst [smem:[#allocation12_spill]] %s2905_s0 }
   0x2   :  { %2928 = sst [smem:[#allocation13_spill]] %s2906_s1 }
   0x3   :  { %2929 = sst [smem:[#allocation14_spill]] %s2907_s2 }
   0x4   :  { %2930 = sst [smem:[#allocation15_spill]] %s2908_s3 }
   0x5   :  { %2931 = sst [smem:[#allocation16_spill]] %s2909_s4 }
   0x6   :  { %2932 = sst [smem:[#allocation17_spill]] %s2910_s5 }
   0x7   :  { %23 = vsyncpa [#allocation3], 0 }
   0x8   :  { %25 = vsyncpa [#allocation3 + $0x1], 0 }
   0x9   :  { %26 = vsyncpa [#allocation5], 0 }
   0xa   :  { %28 = vsyncpa [#allocation5 + $0x1], 0  ;;  %s2561_s24 = smov 0   ;;  %s2563_s25 = smov 0  }
   0xb   :  { %s2565_s26 = smov 0   ;;  %s2567_s27 = smov 0  }
   0xc LB: > { %2933 = sst [smem:[#allocation8_spill]] %s2450_s26  ;;  %s2582_s28 = sadd.s32 4294967295, %s2454_s27   ;;  %s2454_s27 = sphi %s2567_s27, %s2946_s27   ;;  %s2450_s26 = sphi %s2565_s26, %s2948_s26   ;;  %s2446_s25 = sphi %s2563_s25, %s2950_s25   ;;  %s2442_s24 = sphi %s2561_s24, %s2949_s24  }
   0xd   : > { %s2083_s29 = sadd.s32 4294967294, %s2454_s27   ;;  %s2586_s0 = sadd.s32 1, %s2454_s27  }
   0xe   : > { %2934 = sst [smem:[#allocation9_spill]] %s2586_s0  ;;  %s387_s30 = sadd.s32 1, %s2450_s26 }
   0xf   : > { %s384_s18 = ssub.s32 %s2454_s27, %s2586_s0  ;;  %p397_p0 = scmp.ne.s32.totalorder %s2450_s26, %s2446_s25 }
  0x10   : > { %p385_p1 = scmp.eq.s32.totalorder %s384_s18, 0  ;;  %p398_p2 = scmp.eq.s32.totalorder %s2582_s28, 1 }
  0x11   : > { %p403_p3 = scmp.ne.s32.totalorder %s2446_s25, %s2442_s24  ;;  %p404_p4 = scmp.eq.s32.totalorder %s2083_s29, 1 }
  0x12   : > { %s2597_s19 = scalar_select %p385_p1, %s2450_s26, %s387_s30  }
  0x13   : > { %p2599_p5 = por %p398_p2, %p397_p0  ;;  %p2603_p6 = por %p404_p4, %p403_p3 }
  0x14   : > { %2935 = sst [smem:[#allocation10_spill]] %s2597_s19  ;;  %p2086_p7 = scmp.ge.s32.totalorder %s2454_s27, 1 }
  0x15   : > { %s2937_s20 = scalar_select %p2603_p6, 1, 0 }
  0x16   : > { %p503_p8 = scmp.lt.s32.totalorder %s2454_s27, 3 }
  0x17   : > { %2938 = sst [smem:[#allocation11_spill]] %s2937_s20 }
  0x18   : > { %p504_p9 = pnand %p2086_p7, %p503_p8 }
  0x19   : > { %s2939_s2 = sld [smem:[#allocation14_spill]] (!%p504_p9)  ;;  %p561_p10 = scmp.lt.s32.totalorder (!%p504_p9), %s2582_s28, 1 }
  0x1a   : > { %507 = sbr.rel (%p504_p9) target bundleno = 3727 (0xe8f), region = 84  ;;  %s2940_s0 = sld [smem:[#allocation12_spill]] (!%p504_p9) }
  0x1b   : > { %s2941_s3 = sld [smem:[#allocation15_spill]] (!%p504_p9)  ;;  %s2458_s26 = smov (!%p504_p9), 120  }
  0x1c   : > { %s2460_s19 = smov (!%p504_p9), 88   ;;  %s2942_s23 = sld [smem:[#allocation13_spill]] (!%p504_p9) }
  0x1d   : > { %s2462_s18 = smov (!%p504_p9), 64   ;;  %s2463_s21 = smov (!%p504_p9), 80  }
  0x1e   : > { %s2943_s4 = sld [smem:[#allocation16_spill]] (!%p504_p9) }
  0x1f   : > { %v572_v0 = vld [vmem:[%s2939_s2 + $0x18] sm:$0xff]  ;;  %v2456_v1 = vmov 0.0   ;;  %v571_v2 = vld [vmem:[%s2939_s2 + $0x10] sm:$0xff]  ;;  %vm2457_vm0 = vmmov 0   ;;  %s2620_s30 = scalar_select %p561_p10, %s2582_s28, 1  ;;  %v570_v3 = vld [vmem:[%s2939_s2 + $0x8] sm:$0xff] }
  0x20   : > { %2171 = vmatprep.subr.mxu0 %v2456_v1  ;;  %2179 = vmatprep.mubr.msk.f32.mxu0 %vm2457_vm0, %v2456_v1  ;;  %v569_v4 = vld [vmem:[%s2939_s2] sm:$0xff]  ;;  %vm580_vm1 = vcmask 261120   ;;  %vm662_vm2 = vcmask 64512   ;;  %s2944_s5 = sld [smem:[#allocation17_spill]]  ;;  %vm1770_vm3 = vcmask 523264  }
  0x21   : > { %2172 = vmatpush3.msra.mxu0 %v572_v0  ;;  %2182 = vmatprep.subr.mxu1 %v2456_v1  ;;  %s2088_s22 = sshll.u32 %s2620_s30, 3  ;;  %v2089_v6 = vld [vmem:[%s2941_s3] ss:$0 sm:$0xff] }
  0x22   : > { %2173 = vmatprep.subr.mxu0 %v2456_v1  ;;  %2184 = vmatprep.mubr.msk.f32.mxu1 %vm2457_vm0, %v2456_v1  ;;  %s564_s20 = scalar_lea.vmem %s2940_s0, %s2088_s22  ;;  %s2459_s0 = smov 96  }
  0x23   : > { %2174 = vmatpush3.msra.mxu0 %v571_v2  ;;  %v2637_v5 = vld [vmem:[%s564_s20] sm:$0xff]  ;;  %s567_s29 = scalar_lea.vmem %s2942_s23, %s2620_s30  ;;  %s2461_s30 = smov 56  }
  0x24   : > { %2175 = vmatprep.subr.mxu0 %v2456_v1  ;;  %v2668_v14 = vld [vmem:[%s567_s29] ss:$0 sm:$0xff]  ;;  %v656_v43 = vld [vmem:[%s2943_s4 + $0x8] sm:$0xff]  ;;  %s2465_s23 = smov 72   ;;  %s2466_s29 = smov 104  }
  0x25   : > { %2176 = vmatpush3.msra.mxu0 %v570_v3  ;;  %v655_v42 = vld [vmem:[%s2943_s4] sm:$0xff] }
  0x26   : > { %2177 = vmatprep.subr.mxu0 %v2456_v1 }
  0x27   : > { %2178 = vmatpush3.msra.mxu0 %v569_v4 }
  0x28   : > { %2180 = vmatmul.mubr.msk.f32.vlgmr.msra.gmra.mxu0 %vm580_vm1, %v2637_v5  ;;  %2192 = vmatprep.subr.mxu0 %v2456_v1 }
  0x29   : > { %2194 = vmatprep.mubr.msk.f32.mxu0 %vm2457_vm0, %v2456_v1 }
  0xe8   : > { %v650_v7 = vpop.f32.mrf.mxu0 }
  0xe9   : > { %v2648_v8 = vadd.f32 %v2089_v6, %v650_v7 }
  0xea   : > { %v2181_v9 = vpop.f32.mrf.mxu0 }
  0xeb   : > { %832 = vrot.lane.b32.xlu1 %v2648_v8, %s2458_s26  ;;  %660 = vrot.lane.b32.xlu0 %v2648_v8, %s2459_s0  ;;  %s2464_s26 = smov 112  }
  0xef   : > { %834 = vrot.lane.b32.xlu0 %v2648_v8, %s2460_s19  ;;  %s2119_s19 = sshll.u32 %s2582_s28, 7 }
 0x15d   : > { %v661_v10 = vpop.permute.xlu0 %660  ;;  %v833_v12 = vpop.permute.xlu1 %832 }
 0x15e   : > { %2183 = vmatpush3.xpose.msk.msra.mxu1 %vm662_vm2, %v661_v10  ;;  %v657_v10 = vld [vmem:[%s2943_s4 + $0x10] sm:$0xff] }
 0x15f   : > { %2187 = vmatprep.subr.mxu1 %v2456_v1 }
 0x161   : > { %2185 = vmatmul.mubr.msk.f32.vlgmr.msra.gmra.mxu1 %vm662_vm2, %v2648_v8  ;;  %v835_v11 = vpop.permute.xlu0 %834 }
 0x162   : > { %2193 = vmatpush3.xpose.msk.msra.mxu0 %vm662_vm2, %v835_v11  ;;  %2189 = vmatprep.mubr.msk.f32.mxu1 %vm2457_vm0, %v2456_v1 }
 0x163   : > { %2202 = vmatprep.subr.mxu0 %v2456_v1 }
 0x165   : > { %2195 = vmatmul.mubr.msk.f32.vlgmr.msra.gmra.mxu0 %vm662_vm2, %v833_v12 }
 0x166   : > { %2204 = vmatprep.mubr.msk.f32.mxu0 %vm2457_vm0, %v2456_v1  ;;  %2203 = vmatpush3.msra.mxu0 %v656_v43 }
 0x167   : > { %2212 = vmatprep.subr.mxu0 %v2456_v1 }
 0x221   : > { %v733_v13 = vpop.f32.mrf.mxu1 }
 0x222   : > { %v737_v15 = vmul.f32 0.35355338, %v733_v13 }
 0x223   : > { %v2186_v16 = vpop.f32.mrf.mxu1 }
 0x224   : > { %v744_v17 = vadd.f32 %v2668_v14, %v737_v15 }
 0x225   : > { %v906_v18 = vpop.f32.mrf.mxu0 }
 0x226   : > { %v910_v19 = vmul.f32 0.35355338, %v906_v18  ;;  %v745_v20 = vsel %vm662_vm2, %v744_v17, -inf }
 0x227   : > { %746 = vmax.xlane.f32.xlu1 %v745_v20  ;;  %v2196_v21 = vpop.f32.mrf.mxu0 }
 0x228   : > { %v911_v22 = vadd.f32 %v2668_v14, %v910_v19 }
 0x22a   : > { %v912_v23 = vsel %vm662_vm2, %v911_v22, -inf }
 0x22b   : > { %913 = vmax.xlane.f32.xlu0 %v912_v23 }
 0x2b0   : > { %v747_v24 = vpop.xlane.xlu1 %746 }
 0x2b1   : > { %v748_v25 = vsub.f32 %v744_v17, %v747_v24 }
 0x2b3   : > { %v749_v26 = vmul.f32 1.442695, %v748_v25 }
 0x2b4   : > { %v914_v27 = vpop.xlane.xlu0 %913 }
 0x2b5   : > { %2340 = vpow2.f32 %v749_v26  ;;  %v915_v28 = vsub.f32 %v911_v22, %v914_v27 }
 0x2b7   : > { %v916_v29 = vmul.f32 1.442695, %v915_v28 }
 0x2b9   : > { %2342 = vpow2.f32 %v916_v29 }
 0x2c2   : > { %v2341_v30 = vpop.eup %2340 }
 0x2c3   : > { %v751_v31 = vsel %vm662_vm2, %v2341_v30, 0.0 }
 0x2c4   : > { %752 = vadd.xlane.f32.xlu0 %v751_v31 }
 0x2c6   : > { %v2343_v32 = vpop.eup %2342 }
 0x2c7   : > { %v918_v33 = vsel %vm662_vm2, %v2343_v32, 0.0 }
 0x2c8   : > { %919 = vadd.xlane.f32.xlu1 %v918_v33  ;;  %v2108_v33 = vld [vmem:[%s2944_s5] ss:$0 sm:$0xff] }
 0x2d9   : > { %923 = vrot.lane.b32.xlu1 %v2648_v8, %s2461_s30  ;;  %s2467_s30 = smov 48  }
 0x2da   : > { %756 = vrot.lane.b32.xlu0 %v2648_v8, %s2462_s18 }
 0x2dd   : > { %1147 = vrot.lane.b32.xlu1 %v2648_v8, %s2463_s21  ;;  %s2469_s21 = smov [#allocation2]  }
 0x2de   : > { %1145 = vrot.lane.b32.xlu0 %v2648_v8, %s2464_s26  ;;  %s2468_s26 = smov 40  }
 0x34d   : > { %v753_v34 = vpop.xlane.xlu0 %752 }
 0x34e   : > { %2344 = vrcp.f32 %v753_v34 }
 0x351   : > { %v920_v35 = vpop.xlane.xlu1 %919  ;;  %v757_v36 = vpop.permute.xlu0 %756 }
 0x352   : > { %2346 = vrcp.f32 %v920_v35  ;;  %2188 = vmatpush3.msra.mxu1 %v757_v36 }
 0x353   : > { %2197 = vmatprep.subr.mxu1 %v2456_v1 }
 0x355   : > { %v924_v39 = vpop.permute.xlu1 %923  ;;  %v1146_v49 = vpop.permute.xlu0 %1145 }
 0x359   : > { %v1148_v47 = vpop.permute.xlu1 %1147 }
 0x35b   : > { %v2345_v37 = vpop.eup %2344 }
 0x35c   : > { %v755_v38 = vmul.f32 %v2345_v37, %v2341_v30 }
 0x35e   : > { %2190 = vmatmul.mubr.msk.f32.vlgmr.msra.gmra.mxu1 %vm662_vm2, %v755_v38 }
 0x35f   : > { %v2347_v40 = vpop.eup %2346  ;;  %2198 = vmatpush3.msra.mxu1 %v924_v39  ;;  %2199 = vmatprep.mubr.msk.f32.mxu1 %vm2457_vm0, %v2456_v1 }
 0x360   : > { %v922_v41 = vmul.f32 %v2347_v40, %v2343_v32  ;;  %2207 = vmatprep.subr.mxu1 %v2456_v1 }
 0x362   : > { %2200 = vmatmul.mubr.msk.f32.vlgmr.msra.gmra.mxu1 %vm662_vm2, %v922_v41 }
 0x363   : > { %2209 = vmatprep.mubr.msk.f32.mxu1 %vm2457_vm0, %v2456_v1  ;;  %2208 = vmatpush3.msra.mxu1 %v655_v42 }
 0x364   : > { %2217 = vmatprep.subr.mxu1 %v2456_v1 }
 0x41e   : > { %v828_v44 = vpop.f32.mrf.mxu1 }
 0x41f   : > { %2210 = vmatmul.mubr.msk.f32.vlgmr.msra.gmra.mxu1 %vm662_vm2, %v828_v44  ;;  %v1669_v44 = vld [vmem:[%s2913_s8 + $0x18] sm:$0xff] }
 0x420   : > { %v2191_v45 = vpop.f32.mrf.mxu1  ;;  %2219 = vmatprep.mubr.msk.f32.mxu1 %vm2457_vm0, %v2456_v1 }
 0x421   : > { %v1668_v45 = vld [vmem:[%s2913_s8 + $0x10] sm:$0xff] }
 0x422   : > { %v995_v46 = vpop.f32.mrf.mxu1 }
 0x423   : > { %2205 = vmatmul.mubr.msk.f32.vlgmr.msra.gmra.mxu0 %vm662_vm2, %v995_v46  ;;  %v1666_v46 = vld [vmem:[%s2913_s8] sm:$0xff] }
 0x424   : > { %2213 = vmatpush3.xpose.msk.msra.mxu0 %vm662_vm2, %v1148_v47  ;;  %v2201_v48 = vpop.f32.mrf.mxu1  ;;  %2214 = vmatprep.mubr.msk.f32.mxu0 %vm2457_vm0, %v2456_v1 }
 0x425   : > { %2222 = vmatprep.subr.mxu0 %v2456_v1 }
 0x427   : > { %2215 = vmatmul.mubr.msk.f32.vlgmr.msra.gmra.mxu0 %vm662_vm2, %v1146_v49 }
 0x428   : > { %2224 = vmatprep.mubr.msk.f32.mxu0 %vm2457_vm0, %v2456_v1  ;;  %2223 = vmatpush3.msra.mxu0 %v657_v10 }
 0x429   : > { %2232 = vmatprep.subr.mxu0 %v2456_v1 }
 0x4df   : > { %v1141_v50 = vpop.f32.mrf.mxu1 }
 0x4e1   : > { %v2211_v51 = vpop.f32.mrf.mxu1 }
 0x4e2   : > { %v2109_v51 = vld [vmem:[%s2911_s6] ss:$0 sm:$0xff] }
 0x4e3   : > { %v1068_v52 = vpop.f32.mrf.mxu0 }
 0x4e4   : > { %v2707_v53 = vadd.f32 %v1141_v50, %v1068_v52 }
 0x4e5   : > { %v2206_v54 = vpop.f32.mrf.mxu0 }
 0x4e7   : > { %v1219_v55 = vpop.f32.mrf.mxu0 }
 0x4e8   : > { %v1223_v56 = vmul.f32 0.35355338, %v1219_v55 }
 0x4e9   : > { %v2216_v57 = vpop.f32.mrf.mxu0 }
 0x4ea   : > { %v1224_v58 = vadd.f32 %v2668_v14, %v1223_v56  ;;  %v1762_v56 = vld [vmem:[%s2915_s10 + $0x38] sm:$0xff]  ;;  %v1761_v57 = vld [vmem:[%s2915_s10 + $0x30] sm:$0xff] }
 0x4ec   : > { %v1225_v59 = vsel %vm662_vm2, %v1224_v58, -inf }
 0x4ed   : > { %1226 = vmax.xlane.f32.xlu1 %v1225_v59  ;;  %v1759_v59 = vld [vmem:[%s2915_s10 + $0x20] sm:$0xff] }
 0x4fe   : > { %1388 = vrot.lane.b32.xlu1 %v2648_v8, %s2465_s23  ;;  %s2833_s23 = sand.u32 1, %s2446_s25  }
 0x4ff   : > { %s2087_s18 = sshll.u32 %s2833_s23, 3  ;;  %s1957_s2 = scalar_lea.sflag [#allocation3], %s2833_s23 }
 0x500   : > { %s554_s0 = scalar_lea.vmem [#allocation2], %s2087_s18 }
 0x502   : > { %1386 = vrot.lane.b32.xlu1 %v2648_v8, %s2466_s29  ;;  %s1972_s29 = scalar_lea.hbm %s2921_s16, %s2119_s19 }
 0x576   : > { %v1227_v60 = vpop.xlane.xlu1 %1226 }
 0x577   : > { %v1228_v61 = vsub.f32 %v1224_v58, %v1227_v60  ;;  %v1760_v58 = vld [vmem:[%s2915_s10 + $0x28] sm:$0xff]  ;;  %v1758_v60 = vld [vmem:[%s2915_s10 + $0x18] sm:$0xff] }
 0x579   : > { %v1229_v62 = vmul.f32 1.442695, %v1228_v61  ;;  %v1757_v61 = vld [vmem:[%s2915_s10 + $0x10] sm:$0xff] }
 0x57a   : > { %v1389_v6 = vpop.permute.xlu1 %1388 }
 0x57b   : > { %2348 = vpow2.f32 %v1229_v62  ;;  %v1756_v62 = vld [vmem:[%s2915_s10 + $0x8] sm:$0xff] }
 0x57e   : > { %v1387_v9 = vpop.permute.xlu1 %1386 }
 0x588   : > { %v2349_v63 = vpop.eup %2348 }
 0x589   : > { %v1231_v0 = vsel %vm662_vm2, %v2349_v63, 0.0 }
 0x58a   : > { %1232 = vadd.xlane.f32.xlu0 %v1231_v0  ;;  %v2111_v0 = vld [vmem:[%s2914_s9] ss:$0 sm:$0xff] }
 0x5a0   : > { %1236 = vrot.lane.b32.xlu0 %v2648_v8, %s2467_s30  ;;  %s1974_s30 = sshll.u32 %s554_s0, 4  ;;  %s1975_s30 = int_to_ptr.vmem [resolvable:$true] %s1974_s30 }
 0x5a1   : > { %s2364_s3 = scalar_lea.vmem %s1975_s30, 128 }
 0x5a2   : > { %p2365_p11 = scmp.ne.s32.totalorder %s1975_s30, %s2364_s3 }
 0x5a4   : > { %p2366_p12 = pnand %p2365_p11, %p2599_p5 }
 0x5a6   : > { %p2367_p13 = pneg %p2366_p12 }
 0x613   : > { %v1233_v2 = vpop.xlane.xlu0 %1232 }
 0x614   : > { %2350 = vrcp.f32 %v1233_v2 }
 0x617   : > { %v1237_v3 = vpop.permute.xlu0 %1236 }
 0x618   : > { %2218 = vmatpush3.msra.mxu1 %v1237_v3 }
 0x619   : > { %2227 = vmatprep.subr.mxu1 %v2456_v1 }
 0x621   : > { %v2351_v4 = vpop.eup %2350 }
 0x622   : > { %v1235_v7 = vmul.f32 %v2351_v4, %v2349_v63  ;;  %v1755_v63 = vld [vmem:[%s2915_s10] sm:$0xff] }
 0x624   : > { %2220 = vmatmul.mubr.msk.f32.vlgmr.msra.gmra.mxu1 %vm662_vm2, %v1235_v7 }
 0x625   : > { %2228 = vmatpush3.xpose.msk.msra.mxu1 %vm662_vm2, %v1389_v6  ;;  %2229 = vmatprep.mubr.msk.f32.mxu1 %vm2457_vm0, %v2456_v1 }
 0x626   : > { %2237 = vmatprep.subr.mxu1 %v2456_v1 }
 0x628   : > { %2230 = vmatmul.mubr.msk.f32.vlgmr.msra.gmra.mxu1 %vm662_vm2, %v1387_v9 }
 0x629   : > { %2239 = vmatprep.mubr.msk.f32.mxu1 %vm2457_vm0, %v2456_v1 }
 0x6e4   : > { %v1308_v11 = vpop.f32.mrf.mxu1 }
 0x6e5   : > { %2225 = vmatmul.mubr.msk.f32.vlgmr.msra.gmra.mxu0 %vm662_vm2, %v1308_v11 }
 0x6e6   : > { %v2221_v12 = vpop.f32.mrf.mxu1  ;;  %2234 = vmatprep.mubr.msk.f32.mxu0 %vm2457_vm0, %v2456_v1 }
 0x6e7   : > { %v2113_v12 = vld [vmem:[%s2916_s11] ss:$0 sm:$0xff] }
 0x6e8   : > { %v1460_v13 = vpop.f32.mrf.mxu1 }
 0x6e9   : > { %v1464_v15 = vmul.f32 0.35355338, %v1460_v13 }
 0x6ea   : > { %v2231_v16 = vpop.f32.mrf.mxu1 }
 0x6eb   : > { %v1465_v17 = vadd.f32 %v2668_v14, %v1464_v15  ;;  %v658_v14 = vld [vmem:[%s2943_s4 + $0x18] sm:$0xff] }
 0x6ec   : > { %2238 = vmatpush3.msra.mxu1 %v658_v14  ;;  %v1876_v14 = vld [vmem:[%s2919_s14 + $0x8] sm:$0xff] }
 0x6ed   : > { %v1466_v18 = vsel %vm662_vm2, %v1465_v17, -inf  ;;  %2253 = vmatprep.subr.mxu1 %v2456_v1 }
 0x6ee   : > { %1467 = vmax.xlane.f32.xlu0 %v1466_v18 }
 0x704   : > { %1477 = vrot.lane.b32.xlu0 %v2648_v8, %s2468_s26  ;;  %s2368_s26 = sshll.u32 %s2469_s21, 4  ;;  %s2369_s26 = int_to_ptr.vmem [resolvable:$false] %s2368_s26 }
 0x705   : > { %s2370_s4 = scalar_lea.vmem %s2369_s26, 256  ;;  %p2371_p0 = scmp.lt.s32.totalorder %s1975_s30, %s2369_s26 }
 0x706   : > { %p2372_p1 = scmp.lt.s32.totalorder %s2370_s4, %s2364_s3 }
 0x708   : > { %p2373_p2 = por %p2372_p1, %p2371_p0 }
 0x70a   : > { %p2374_p3 = pnand %p2373_p2, %p2367_p13 }
 0x777   : > { %v1468_v19 = vpop.xlane.xlu0 %1467 }
 0x778   : > { %v1469_v20 = vsub.f32 %v1465_v17, %v1468_v19 }
 0x77a   : > { %v1470_v21 = vmul.f32 1.442695, %v1469_v20 }
 0x77b   : > { %v1478_v22 = vpop.permute.xlu0 %1477 }
 0x77c   : > { %2352 = vpow2.f32 %v1470_v21  ;;  %2233 = vmatpush3.msra.mxu0 %v1478_v22 }
 0x77d   : > { %2242 = vmatprep.subr.mxu0 %v2456_v1 }
 0x789   : > { %v2353_v23 = vpop.eup %2352 }
 0x78a   : > { %v1472_v24 = vsel %vm662_vm2, %v2353_v23, 0.0 }
 0x78b   : > { %1473 = vadd.xlane.f32.xlu1 %v1472_v24  ;;  %v1878_v24 = vld [vmem:[%s2919_s14 + $0x18] sm:$0xff] }
 0x7a5   : > { %v1381_v25 = vpop.f32.mrf.mxu0 }
 0x7a6   : > { %v1385_v26 = vadd.f32 %v1381_v25, %v2707_v53  ;;  %v2110_v53 = vld [vmem:[%s2912_s7] ss:$0 sm:$0xff]  ;;  %v1877_v25 = vld [vmem:[%s2919_s14 + $0x10] sm:$0xff] }
 0x7a7   : > { %v2226_v8 = vpop.f32.mrf.mxu0 }
 0x814   : > { %v1474_v27 = vpop.xlane.xlu1 %1473 }
 0x815   : > { %2354 = vrcp.f32 %v1474_v27 }
 0x822   : > { %v2355_v28 = vpop.eup %2354 }
 0x823   : > { %v1476_v29 = vmul.f32 %v2355_v28, %v2353_v23 }
 0x825   : > { %2235 = vmatmul.mubr.msk.f32.vlgmr.msra.gmra.mxu0 %vm662_vm2, %v1476_v29 }
 0x826   : > { %2250 = vmatprep.mubr.msk.f32.mxu0 %vm2457_vm0, %v2456_v1  ;;  %2243 = vmatpush3.msra.mxu0 %v1669_v44 }
 0x827   : > { %2244 = vmatprep.subr.mxu0 %v2456_v1 }
 0x828   : > { %2245 = vmatpush3.msra.mxu0 %v1668_v45 }
 0x829   : > { %2246 = vmatprep.subr.mxu0 %v2456_v1 }
 0x8e5   : > { %v1549_v30 = vpop.f32.mrf.mxu0 }
 0x8e6   : > { %2240 = vmatmul.mubr.msk.f32.vlgmr.msra.gmra.mxu1 %vm662_vm2, %v1549_v30  ;;  %v2115_v30 = vld [vmem:[%s2917_s12] ss:$0 sm:$0xff] }
 0x8e7   : > { %v2236_v31 = vpop.f32.mrf.mxu0  ;;  %2269 = vmatprep.mubr.msk.f32.mxu1 %vm2457_vm0, %v2456_v1  ;;  %2254 = vmatpush3.msra.mxu1 %v1762_v56 }
 0x8e8   : > { %2255 = vmatprep.subr.mxu1 %v2456_v1 }
 0x8e9   : > { %2256 = vmatpush3.msra.mxu1 %v1761_v57 }
 0x8ea   : > { %2257 = vmatprep.subr.mxu1 %v2456_v1 }
 0x8eb   : > { %2258 = vmatpush3.msra.mxu1 %v1760_v58 }
 0x8ec   : > { %2259 = vmatprep.subr.mxu1 %v2456_v1 }
 0x8ed   : > { %2260 = vmatpush3.msra.mxu1 %v1759_v59 }
 0x8ee   : > { %2261 = vmatprep.subr.mxu1 %v2456_v1 }
 0x8ef   : > { %2262 = vmatpush3.msra.mxu1 %v1758_v60 }
 0x8f0   : > { %2263 = vmatprep.subr.mxu1 %v2456_v1 }
 0x8f1   : > { %2264 = vmatpush3.msra.mxu1 %v1757_v61 }
 0x8f2   : > { %2265 = vmatprep.subr.mxu1 %v2456_v1 }
 0x8f3   : > { %2266 = vmatpush3.msra.mxu1 %v1756_v62 }
 0x8f4   : > { %2267 = vmatprep.subr.mxu1 %v2456_v1 }
 0x8f5   : > { %2268 = vmatpush3.msra.mxu1 %v1755_v63 }
 0x9a6   : > { %v1622_v32 = vpop.f32.mrf.mxu1 }
 0x9a7   : > { %v1626_v34 = vadd.f32 %v1622_v32, %v1385_v26  ;;  %v1875_v26 = vld [vmem:[%s2919_s14] sm:$0xff] }
 0x9a8   : > { %v2241_v35 = vpop.f32.mrf.mxu1 }
 0x9a9   : > { %v1634_v36 = vadd.f32 %v2108_v33, %v1626_v34 }
 0x9ab   : > { %v1635_v37 = vadd.f32 %v1634_v36, %v2637_v5  ;;  %v1667_v5 = vld [vmem:[%s2913_s8 + $0x8] sm:$0xff] }
 0x9ac   : > { %2247 = vmatpush3.msra.mxu0 %v1667_v5 }
 0x9ad   : > { %v1638_v38 = vsel %vm580_vm1, %v1635_v37, 0.0  ;;  %2248 = vmatprep.subr.mxu0 %v2456_v1 }
 0x9ae   : > { %1639 = vadd.xlane.f32.xlu1 %v1638_v38  ;;  %2249 = vmatpush3.msra.mxu0 %v1666_v46 }
 0x9af   : > { %2272 = vmatprep.subr.mxu0 %v2456_v1 }
 0xa37   : > { %v1640_v39 = vpop.xlane.xlu1 %1639 }
 0xa38   : > { %v1642_v40 = vmul.f32 0.03125, %v1640_v39 }
 0xa3a   : > { %v1643_v41 = vsub.f32 %v1635_v37, %v1642_v40 }
 0xa3c   : > { %v1644_v42 = vmul.f32 %v1643_v41, %v1643_v41 }
 0xa3e   : > { %v1645_v43 = vsel %vm580_vm1, %v1644_v42, 0.0 }
 0xa3f   : > { %1646 = vadd.xlane.f32.xlu1 %v1645_v43 }
 0xac8   : > { %v1647_v47 = vpop.xlane.xlu1 %1646 }
 0xac9   : > { %v1648_v48 = vmul.f32 0.03125, %v1647_v47 }
 0xacb   : > { %v1649_v49 = vadd.f32 1e-12, %v1648_v48 }
 0xacd   : > { %2356 = vrsqrt.f32 %v1649_v49 }
 0xada   : > { %v2357_v50 = vpop.eup %2356 }
 0xadb   : > { %v1651_v52 = vmul.f32 %v2357_v50, %v1643_v41 }
 0xadd   : > { %v1658_v54 = vmul.f32 %v2109_v51, %v1651_v52 }
 0xadf   : > { %v1665_v55 = vadd.f32 %v2110_v53, %v1658_v54 }
 0xae1   : > { %2251 = vmatmul.mubr.msk.f32.vlgmr.msra.gmra.mxu0 %vm580_vm1, %v1665_v55 }
 0xae2   : > { %2280 = vmatprep.mubr.msk.f32.mxu0 %vm2457_vm0, %v2456_v1  ;;  %2273 = vmatpush3.msra.mxu0 %v1878_v24 }
 0xae3   : > { %2274 = vmatprep.subr.mxu0 %v2456_v1 }
 0xae4   : > { %2275 = vmatpush3.msra.mxu0 %v1877_v25 }
 0xae5   : > { %2276 = vmatprep.subr.mxu0 %v2456_v1 }
 0xae6   : > { %2277 = vmatpush3.msra.mxu0 %v1876_v14 }
 0xae7   : > { %2278 = vmatprep.subr.mxu0 %v2456_v1  ;;  %v2116_v1 = vld [vmem:[%s2918_s13] ss:$0 sm:$0xff] }
 0xae8   : > { %2279 = vmatpush3.msra.mxu0 %v1875_v26 }
 0xba1   : > { %v1746_v2 = vpop.f32.mrf.mxu0 }
 0xba2   : > { %v1747_v3 = vadd.f32 %v2111_v0, %v1746_v2 }
 0xba3   : > { %v2252_v4 = vpop.f32.mrf.mxu0 }
 0xba4   : > { %v1751_v6 = vmul.f32 0.70710677, %v1747_v3  ;;  %v1750_v9 = vmul.f32 0.5, %v1747_v3 }
 0xba6   : > { %2358 = verf.f32 %v1751_v6 }
 0xbb3   : > { %v2359_v7 = vpop.eup %2358 }
 0xbb4   : > { %v1753_v10 = vadd.f32 1.0, %v2359_v7 }
 0xbb6   : > { %v1754_v11 = vmul.f32 %v1753_v10, %v1750_v9 }
 0xbb8   : > { %2270 = vmatmul.mubr.msk.f32.vlgmr.msra.gmra.mxu1 %vm1770_vm3, %v1754_v11 }
 0xc78   : > { %v1840_v13 = vpop.f32.mrf.mxu1 }
 0xc79   : > { %v1841_v15 = vadd.f32 %v2113_v12, %v1840_v13 }
 0xc7a   : > { %v2271_v16 = vpop.f32.mrf.mxu1 }
 0xc7b   : > { %v1844_v17 = vadd.f32 %v1841_v15, %v1665_v55 }
 0xc7d   : > { %v1847_v18 = vsel %vm580_vm1, %v1844_v17, 0.0 }
 0xc7e   : > { %1848 = vadd.xlane.f32.xlu1 %v1847_v18 }
 0xd07   : > { %v1849_v19 = vpop.xlane.xlu1 %1848 }
 0xd08   : > { %v1850_v20 = vmul.f32 0.03125, %v1849_v19 }
 0xd0a   : > { %v1851_v21 = vsub.f32 %v1844_v17, %v1850_v20 }
 0xd0c   : > { %v1852_v22 = vmul.f32 %v1851_v21, %v1851_v21 }
 0xd0e   : > { %v1853_v23 = vsel %vm580_vm1, %v1852_v22, 0.0 }
 0xd0f   : > { %1854 = vadd.xlane.f32.xlu1 %v1853_v23 }
 0xd98   : > { %v1855_v8 = vpop.xlane.xlu1 %1854 }
 0xd99   : > { %v1856_v27 = vmul.f32 0.03125, %v1855_v8 }
 0xd9b   : > { %v1857_v28 = vadd.f32 1e-12, %v1856_v27 }
 0xd9d   : > { %2360 = vrsqrt.f32 %v1857_v28 }
 0xdaa   : > { %v2361_v29 = vpop.eup %2360 }
 0xdab   : > { %v1859_v31 = vmul.f32 %v2361_v29, %v1851_v21 }
 0xdad   : > { %v1866_v32 = vmul.f32 %v2115_v30, %v1859_v31 }
 0xdaf   : > { %v1873_v33 = vadd.f32 %v2116_v1, %v1866_v32 }
 0xdb1   : > { %2281 = vmatmul.mubr.msk.f32.vlgmr.msra.gmra.mxu0 %vm580_vm1, %v1873_v33  ;;  %1874 = vst.msk [vmem:[%s554_s0] sm:$0xff] %vm580_vm1, %v1873_v33 }
 0xdb2   : > { %2377 = shalt.err (!%p2374_p3)
}
 0xdb3   : > { %s2378_s18 = scalar_lea.hbm %s1972_s29, 128  ;;  %s2382_s20 = scalar_lea.hbm %s2921_s16, 256 }
 0xdb4   : > { %p2379_p4 = scmp.ne.s32.totalorder %s1972_s29, %s2378_s18  ;;  %p2383_p9 = scmp.lt.s32.totalorder %s1972_s29, %s2921_s16 }
 0xdb5   : > { %p2384_p10 = scmp.lt.s32.totalorder %s2382_s20, %s2378_s18 }
 0xdb6   : > { %p2380_p7 = pnand %p2379_p4, %p2599_p5 }
 0xdb7   : > { %p2385_p11 = por %p2384_p10, %p2383_p9 }
 0xdb8   : > { %p2381_p8 = pneg %p2380_p7 }
 0xdba   : > { %p2386_p12 = pnand %p2385_p11, %p2381_p8 }
 0xdbc   : > { %2389 = shalt.err (!%p2386_p12)
}
 0xdbd   : > { %2283 = dma.vmem_to_hbm [thread:$0]  (%p2599_p5), %s1975_s30, 128, %s1972_s29, %s1957_s2   ;;  %v1879_v34 = vld [vmem:[%s2920_s15] sm:$0x1]  ;;  %vm1954_vm4 = vcmask 253952  }
 0xdbe   : > { %s2120_s5 = sshll.u32 %s2582_s28, 4  ;;  %s560_s21 = scalar_lea.vmem [#allocation4], %s2833_s23 }
 0xdbf   : > { %s1987_s26 = sshll.u32 %s560_s21, 4  ;;  %s2869_s19 = scalar_lea.hbm %s2922_s17, %s2120_s5  ;;  %s1988_s26 = int_to_ptr.vmem [resolvable:$true] %s1987_s26 }
 0xdc0   : > { %s1962_s2 = scalar_lea.sflag [#allocation5], %s2833_s23  ;;  %s2390_s29 = scalar_lea.vmem %s1988_s26, 16 }
 0xdc1   : > { %p2391_p13 = scmp.ne.s32.totalorder %s1988_s26, %s2390_s29  ;;  %s2470_s30 = smov [#allocation4]  }
 0xdc2   : > { %s2394_s20 = sshll.u32 %s2470_s30, 4  ;;  %s2395_s20 = int_to_ptr.vmem [resolvable:$false] %s2394_s20 }
 0xdc3   : > { %p2392_p0 = pnand %p2391_p13, %p2599_p5  ;;  %s2396_s28 = scalar_lea.vmem %s2395_s20, 32 }
 0xdc4   : > { %p2397_p2 = scmp.lt.s32.totalorder %s1988_s26, %s2395_s20  ;;  %p2398_p3 = scmp.lt.s32.totalorder %s2396_s28, %s2390_s29 }
 0xdc5   : > { %p2393_p1 = pneg %p2392_p0 }
 0xdc6   : > { %p2399_p4 = por %p2398_p3, %p2397_p2 }
 0xdc8   : > { %p2400_p7 = pnand %p2399_p4, %p2393_p1 }
 0xe71   : > { %v1949_v35 = vpop.f32.mrf.mxu0 }
 0xe72   : > { %v1950_v36 = vadd.f32 %v1949_v35, %v1879_v34 }
 0xe73   : > { %v2282_v37 = vpop.f32.mrf.mxu0 }
 0xe74   : > { %2362 = vtanh.f32 %v1950_v36 }
 0xe81   : > { %v2363_v38 = vpop.eup %2362 }
 0xe82   : > { %1955 = vst.msk [vmem:[%s560_s21] sm:$0x1] %vm1954_vm4, %v2363_v38 }
 0xe83   : > { %2403 = shalt.err (!%p2400_p7)
}
 0xe84   : > { %s2404_s22 = scalar_lea.hbm %s2869_s19, 16  ;;  %s2408_s4 = scalar_lea.hbm %s2922_s17, 32 }
 0xe85   : > { %p2405_p8 = scmp.ne.s32.totalorder %s2869_s19, %s2404_s22  ;;  %p2409_p11 = scmp.lt.s32.totalorder %s2869_s19, %s2922_s17 }
 0xe86   : > { %p2410_p12 = scmp.lt.s32.totalorder %s2408_s4, %s2404_s22 }
 0xe87   : > { %p2406_p9 = pnand %p2405_p8, %p2599_p5 }
 0xe88   : > { %p2411_p13 = por %p2410_p12, %p2409_p11 }
 0xe89   : > { %p2407_p10 = pneg %p2406_p9 }
 0xe8b   : > { %p2412_p0 = pnand %p2411_p13, %p2407_p10 }
 0xe8d   : > { %2415 = shalt.err (!%p2412_p0)
}
 0xe8e   : > { %2284 = dma.vmem_to_hbm [thread:$0]  (%p2599_p5), %s1988_s26, 16, %s2869_s19, %s1962_s2  }
 0xe8f PF: > { %p2294_p1 = scmp.ge.s32.totalorder %s2454_s27, 2  ;;  %s1999_s0 = sand.u32 1, %s2442_s24  }
 0xe90   : > { %s2000_s29 = scalar_lea.sflag [#allocation3], %s1999_s0 }
 0xe91   : > { %p2288_p2 = pnand %p2294_p1, %p2603_p6 }
 0xe93   : > { %p2289_p3 = pneg %p2288_p2 }
 0xe95   : > { %2433 = dma.done.wait (%p2289_p3), %s2000_s29, 128  }
 0xe96   : > { %2435 = vsyncadd (%p2289_p3), %s2000_s29, 4294967168  ;;  %s2009_s30 = scalar_lea.sflag [#allocation5], %s1999_s0 }
 0xe97   : > { %2437 = dma.done.wait (%p2289_p3), %s2009_s30, 16  }
 0xe98   : > { %2439 = vsyncadd (%p2289_p3), %s2009_s30, 4294967280  ;;  %s2946_s27 = sld [smem:[#allocation9_spill]]  ;;  %s2949_s24 = smov %s2446_s25 }
 0xe99   : > { %s2947_s1 = sld [smem:[#allocation8_spill]] }
 0xe9a   : > { %s2948_s26 = sld [smem:[#allocation10_spill]] }
 0xe9e   : > { %p31_p5 = scmp.ge.s32.totalorder %s2946_s27, 4  }
 0xe9f   : > { %s2950_s25 = smov %s2947_s1 }
 0xea0   :  { %33 = sbr.rel (!%p31_p5) target bundleno = 12 (0xc), region = 139 }
 0xea5   :  { %2013 = vsyncpa [#allocation3], 1 }
 0xea6   :  { %2015 = vsyncpa [#allocation3 + $0x1], 1 }
 0xea7   :  { %2016 = vsyncpa [#allocation5], 1 }
 0xea8   :  { %2018 = vsyncpa [#allocation5 + $0x1], 1 }

</bundles_post_ra>
